<compile_context>
chip_gen: v7x
topology: tpu7x:2x2x1
jax: 0.10.0
libtpu: 0.0.40
codegen_flags: <defaults>
</compile_context>

<pallas_src>
import functools

import jax
import jax.numpy as jnp
from jax.experimental import pallas as pl
from jax.experimental.pallas import tpu as pltpu

LANE = 128
_NEG_INF = -1e30


def _round_up(x, m):
    return ((x + m - 1) // m) * m


# -----------------------------------------------------------------------------
# Fused Pallas kernel: 3x InceptionBlock + log_softmax in a single grid step.
# -----------------------------------------------------------------------------
def _digcn_fused_kernel(num_classes, x_ref, a1_ref, a2_ref, w_ref, b_ref, o_ref):
    """
    x_ref : (Np, Dp)    bf16  zero-padded node features
    a1_ref: (Np, Np)    bf16  dense adjacency #1  (A[dst, src] = w)
    a2_ref: (Np, Np)    bf16  dense adjacency #2
    w_ref : (9, Dp, Dp) bf16  stacked padded weights  [block * 3 + {lin,conv1,conv2}]
    b_ref : (9, 1, Dp)  f32   stacked padded biases
    o_ref : (Np, Dp)    f32   log-probs (pad lanes invalid; sliced off outside)
    """
    a1 = a1_ref[...]
    a2 = a2_ref[...]

    def inception(xb, base):
        # x0 = Linear(x)
        x0 = jnp.dot(xb, w_ref[base + 0],
                     preferred_element_type=jnp.float32) + b_ref[base + 0]
        # x1 = DIGCNConv(x, A1) = A1 @ (X @ W1) + b1
        xw1 = jnp.dot(xb, w_ref[base + 1],
                      preferred_element_type=jnp.float32).astype(jnp.bfloat16)
        x1 = jnp.dot(a1, xw1,
                     preferred_element_type=jnp.float32) + b_ref[base + 1]
        # x2 = DIGCNConv(x, A2) = A2 @ (X @ W2) + b2
        xw2 = jnp.dot(xb, w_ref[base + 2],
                      preferred_element_type=jnp.float32).astype(jnp.bfloat16)
        x2 = jnp.dot(a2, xw2,
                     preferred_element_type=jnp.float32) + b_ref[base + 2]
        # dropout (eval mode) is the identity; sum the three branches.
        return x0 + x1 + x2

    h = inception(x_ref[...], 0)                      # block 1
    h = inception(h.astype(jnp.bfloat16), 3)          # block 2
    h = inception(h.astype(jnp.bfloat16), 6)          # block 3

    # Numerically-stable log_softmax over the real class lanes only.
    dp = o_ref.shape[1]
    col = jax.lax.broadcasted_iota(jnp.int32, (1, dp), 1)
    logits = h + jnp.where(col < num_classes, 0.0, _NEG_INF).astype(jnp.float32)
    m = jnp.max(logits, axis=-1, keepdims=True)
    s = logits - m
    lse = jnp.log(jnp.sum(jnp.exp(s), axis=-1, keepdims=True))
    o_ref[...] = (s - lse).astype(o_ref.dtype)


# -----------------------------------------------------------------------------
# Wrapper: densify edges, pad to lane-dense layout, call the fused kernel.
# -----------------------------------------------------------------------------
def digcn_inception_forward(features, edge_index_tuple, edge_weight_tuple, params):
    n, f = features.shape
    hidden = params["ib1"]["w_ln"].shape[1]
    label_dim = params["ib3"]["w_ln"].shape[1]

    dp = _round_up(max(f, hidden, label_dim, LANE), LANE)   # padded lane dim
    np_ = _round_up(n, 8)                                   # padded node dim

    # Densify sparse propagation: out[dst] += w * x[src]  =>  A[dst, src] += w
    def densify(edge_index, edge_weight):
        a = jnp.zeros((np_, np_), jnp.float32)
        return a.at[edge_index[1], edge_index[0]].add(edge_weight)

    (ei1, ei2) = edge_index_tuple
    (ew1, ew2) = edge_weight_tuple
    a1 = densify(ei1, ew1).astype(jnp.bfloat16)
    a2 = densify(ei2, ew2).astype(jnp.bfloat16)

    # Zero-pad features / weights / biases to (multiples of) 128 lanes.
    x = (jnp.zeros((np_, dp), jnp.float32)
         .at[:n, :f].set(features.astype(jnp.float32))
         .astype(jnp.bfloat16))

    def pad_w(w):
        return jnp.zeros((dp, dp), jnp.float32).at[:w.shape[0], :w.shape[1]].set(w)

    def pad_b(b):
        return jnp.zeros((1, dp), jnp.float32).at[:, :b.shape[1]].set(b)

    w_stack, b_stack = [], []
    for blk in ("ib1", "ib2", "ib3"):
        p = params[blk]
        for wname, bname in (("w_ln", "b_ln"), ("w_1", "b_1"), ("w_2", "b_2")):
            w_stack.append(pad_w(p[wname]))
            b_stack.append(pad_b(p[bname]))
    w = jnp.stack(w_stack).astype(jnp.bfloat16)   # (9, Dp, Dp)
    b = jnp.stack(b_stack)                        # (9, 1, Dp) f32

    kernel = functools.partial(_digcn_fused_kernel, label_dim)
    out_padded = pl.pallas_call(
        kernel,
        out_shape=jax.ShapeDtypeStruct((np_, dp), jnp.float32),
        grid=(1,),
        in_specs=[
            pl.BlockSpec((np_, dp), lambda i: (0, 0)),      # X
            pl.BlockSpec((np_, np_), lambda i: (0, 0)),     # A1
            pl.BlockSpec((np_, np_), lambda i: (0, 0)),     # A2
            pl.BlockSpec((9, dp, dp), lambda i: (0, 0, 0)),  # weights
            pl.BlockSpec((9, 1, dp), lambda i: (0, 0, 0)),   # biases
        ],
        out_specs=pl.BlockSpec((np_, dp), lambda i: (0, 0)),
        compiler_params=pltpu.CompilerParams(
            dimension_semantics=("arbitrary",),   # single step: no megacore split
            vmem_limit_bytes=32 * 1024 * 1024,
        ),
    )(x, a1, a2, w, b)

    return out_padded[:n, :label_dim]


# -----------------------------------------------------------------------------
# Pure-JAX reference with identical bf16 quantization (for correctness check).
# -----------------------------------------------------------------------------
def _reference_forward(features, edge_index_tuple, edge_weight_tuple, params):
    n = features.shape[0]
    bf16 = jnp.bfloat16

    def densify(ei, ew):
        a = jnp.zeros((n, n), jnp.float32)
        return a.at[ei[1], ei[0]].add(ew)

    a1 = densify(edge_index_tuple[0], edge_weight_tuple[0]).astype(bf16)
    a2 = densify(edge_index_tuple[1], edge_weight_tuple[1]).astype(bf16)

    def block(xb, p):
        x0 = jnp.dot(xb, p["w_ln"].astype(bf16),
                     preferred_element_type=jnp.float32) + p["b_ln"]
        xw1 = jnp.dot(xb, p["w_1"].astype(bf16),
                      preferred_element_type=jnp.float32).astype(bf16)
        x1 = jnp.dot(a1, xw1, preferred_element_type=jnp.float32) + p["b_1"]
        xw2 = jnp.dot(xb, p["w_2"].astype(bf16),
                      preferred_element_type=jnp.float32).astype(bf16)
        x2 = jnp.dot(a2, xw2, preferred_element_type=jnp.float32) + p["b_2"]
        return x0 + x1 + x2

    h = block(features.astype(bf16), params["ib1"])
    h = block(h.astype(bf16), params["ib2"])
    h = block(h.astype(bf16), params["ib3"])
    return jax.nn.log_softmax(h, axis=1)


# -----------------------------------------------------------------------------
# Deterministic parameter construction (PyTorch-equivalent shapes, stored (in,out)).
# -----------------------------------------------------------------------------
def _glorot(key, shape):
    fan_in, fan_out = shape
    limit = (6.0 / (fan_in + fan_out)) ** 0.5
    return jax.random.uniform(key, shape, jnp.float32, -limit, limit)


def make_params(key, num_features, hidden, label_dim):
    dims = [(num_features, hidden), (hidden, hidden), (hidden, label_dim)]
    params = {}
    for bi, (din, dout) in enumerate(dims, start=1):
        key, k_ln, k_w1, k_w2, k_bln = jax.random.split(key, 5)
        params[f"ib{bi}"] = {
            # Linear layer (stored as (in, out) == PyTorch weight.T)
            "w_ln": _glorot(k_ln, (din, dout)),
            "b_ln": jax.random.uniform(
                k_bln, (1, dout), jnp.float32,
                -(1.0 / din) ** 0.5, (1.0 / din) ** 0.5),
            # DIGCNConv layers: glorot weight, zero bias (reset_parameters)
            "w_1": _glorot(k_w1, (din, dout)),
            "b_1": jnp.zeros((1, dout), jnp.float32),
            "w_2": _glorot(k_w2, (din, dout)),
            "b_2": jnp.zeros((1, dout), jnp.float32),
        }
    return params


# -----------------------------------------------------------------------------
# Main
# -----------------------------------------------------------------------------
if __name__ == "__main__":
    NUM_NODES = 128
    NUM_FEATURES = 64
    HIDDEN = 32
    LABEL_DIM = 8
    NUM_EDGES = 512

    key = jax.random.PRNGKey(0)
    (k_feat, k_e1s, k_e1d, k_w1, k_e2s, k_e2d, k_w2, k_param) = jax.random.split(key, 8)

    features = jax.random.normal(k_feat, (NUM_NODES, NUM_FEATURES), jnp.float32)

    edge_index1 = jnp.stack([
        jax.random.randint(k_e1s, (NUM_EDGES,), 0, NUM_NODES),
        jax.random.randint(k_e1d, (NUM_EDGES,), 0, NUM_NODES)], axis=0)
    edge_weight1 = jax.random.uniform(k_w1, (NUM_EDGES,), jnp.float32)

    edge_index2 = jnp.stack([
        jax.random.randint(k_e2s, (NUM_EDGES,), 0, NUM_NODES),
        jax.random.randint(k_e2d, (NUM_EDGES,), 0, NUM_NODES)], axis=0)
    edge_weight2 = jnp.array(
        jax.random.uniform(k_w2, (NUM_EDGES,), jnp.float32))

    params = make_params(k_param, NUM_FEATURES, HIDDEN, LABEL_DIM)

    fwd = jax.jit(digcn_inception_forward)
    out = fwd(features, (edge_index1, edge_index2),
              (edge_weight1, edge_weight2), params)
    out = jax.block_until_ready(out)

    assert out.shape == (NUM_NODES, LABEL_DIM)
    # log-softmax rows must sum (in prob space) to ~1
    assert jnp.allclose(jnp.sum(jnp.exp(out), axis=1), 1.0, atol=1e-4)

    # Compare against a pure-JAX reference using the same bf16 quantization.
    ref = _reference_forward(features, (edge_index1, edge_index2),
                             (edge_weight1, edge_weight2), params)
    assert jnp.allclose(out, ref, atol=5e-2, rtol=1e-2), (
        float(jnp.max(jnp.abs(out - ref))))

    print("KERNEL_OK")
</pallas_src>

<mosaic_0001>
module attributes {stable_mosaic.version = 11 : i64} {
  func.func private @main(%arg0: i32) attributes {dimension_semantics = [#tpu.dimension_semantics<core_parallel>], iteration_bounds = array<i64: 2>, tpu.core_type = #tpu.core_type<sc_scalar_subcore>, window_params = []} {
    return
  }
}

module attributes {stable_mosaic.version = 11 : i64} {
  func.func private @main(%arg0: i32) attributes {dimension_semantics = [#tpu.dimension_semantics<core_parallel>], iteration_bounds = array<i64: 2>, tpu.core_type = #tpu.core_type<sc_scalar_subcore>, window_params = []} {
    return
  }
}

module attributes {stable_mosaic.version = 11 : i64} {
  func.func @_digcn_fused_kernel(%arg0: i32, %arg1: memref<128x128xbf16, #tpu.memory_space<vmem>>, %arg2: memref<128x128xbf16, #tpu.memory_space<vmem>>, %arg3: memref<128x128xbf16, #tpu.memory_space<vmem>>, %arg4: memref<9x128x128xbf16, #tpu.memory_space<vmem>>, %arg5: memref<9x1x128xf32, #tpu.memory_space<vmem>>, %arg6: memref<128x128xf32, #tpu.memory_space<vmem>>) attributes {dimension_semantics = [#tpu.dimension_semantics<arbitrary>], iteration_bounds = array<i64: 1>, scalar_prefetch = 0 : i64, scratch_operands = 0 : i64, tpu.core_type = #tpu.core_type<tc>, window_params = [{pipeline_mode = #tpu.pipeline_mode<synchronous>, transform_indices = @transform_0, window_bounds = array<i64: 128, 128>}, {pipeline_mode = #tpu.pipeline_mode<synchronous>, transform_indices = @transform_1, window_bounds = array<i64: 128, 128>}, {pipeline_mode = #tpu.pipeline_mode<synchronous>, transform_indices = @transform_2, window_bounds = array<i64: 128, 128>}, {pipeline_mode = #tpu.pipeline_mode<synchronous>, transform_indices = @transform_3, window_bounds = array<i64: 9, 128, 128>}, {pipeline_mode = #tpu.pipeline_mode<synchronous>, transform_indices = @transform_4, window_bounds = array<i64: 9, 1, 128>}, {pipeline_mode = #tpu.pipeline_mode<synchronous>, transform_indices = @transform_5, window_bounds = array<i64: 128, 128>}]} {
    %c0 = arith.constant 0 : index
    %c0_0 = arith.constant 0 : index
    %0 = vector.load %arg2[%c0, %c0_0] : memref<128x128xbf16, #tpu.memory_space<vmem>>, vector<128x128xbf16>
    %c0_1 = arith.constant 0 : index
    %c0_2 = arith.constant 0 : index
    %1 = vector.load %arg3[%c0_1, %c0_2] : memref<128x128xbf16, #tpu.memory_space<vmem>>, vector<128x128xbf16>
    %c0_3 = arith.constant 0 : index
    %c0_4 = arith.constant 0 : index
    %2 = vector.load %arg1[%c0_3, %c0_4] : memref<128x128xbf16, #tpu.memory_space<vmem>>, vector<128x128xbf16>
    %c0_5 = arith.constant 0 : index
    %c0_6 = arith.constant 0 : index
    %c0_7 = arith.constant 0 : index
    %3 = vector.load %arg4[%c0_5, %c0_6, %c0_7] : memref<9x128x128xbf16, #tpu.memory_space<vmem>>, vector<1x128x128xbf16>
    %4 = vector.shape_cast %3 : vector<1x128x128xbf16> to vector<128x128xbf16>
    %cst = arith.constant dense<0.000000e+00> : vector<128x128xf32>
    %5 = tpu.matmul %2, %4, %cst {dimension_numbers = #tpu.dot_dimension_numbers<[1], [0], [0], [1], [0, 0, 1, 1], [], []>} : vector<128x128xbf16>, vector<128x128xbf16>, vector<128x128xf32> -> vector<128x128xf32>
    %c0_8 = arith.constant 0 : index
    %c0_9 = arith.constant 0 : index
    %c0_10 = arith.constant 0 : index
    %6 = vector.load %arg5[%c0_8, %c0_9, %c0_10] : memref<9x1x128xf32, #tpu.memory_space<vmem>>, vector<1x1x128xf32>
    %7 = vector.shape_cast %6 : vector<1x1x128xf32> to vector<1x128xf32>
    %8 = vector.broadcast %7 : vector<1x128xf32> to vector<128x128xf32>
    %9 = arith.addf %5, %8 : vector<128x128xf32>
    %c1 = arith.constant 1 : index
    %c0_11 = arith.constant 0 : index
    %c0_12 = arith.constant 0 : index
    %10 = vector.load %arg4[%c1, %c0_11, %c0_12] : memref<9x128x128xbf16, #tpu.memory_space<vmem>>, vector<1x128x128xbf16>
    %11 = vector.shape_cast %10 : vector<1x128x128xbf16> to vector<128x128xbf16>
    %cst_13 = arith.constant dense<0.000000e+00> : vector<128x128xf32>
    %12 = tpu.matmul %2, %11, %cst_13 {dimension_numbers = #tpu.dot_dimension_numbers<[1], [0], [0], [1], [0, 0, 1, 1], [], []>} : vector<128x128xbf16>, vector<128x128xbf16>, vector<128x128xf32> -> vector<128x128xf32>
    %13 = arith.truncf %12 : vector<128x128xf32> to vector<128x128xbf16>
    %cst_14 = arith.constant dense<0.000000e+00> : vector<128x128xf32>
    %14 = tpu.matmul %0, %13, %cst_14 {dimension_numbers = #tpu.dot_dimension_numbers<[1], [0], [0], [1], [0, 0, 1, 1], [], []>} : vector<128x128xbf16>, vector<128x128xbf16>, vector<128x128xf32> -> vector<128x128xf32>
    %c1_15 = arith.constant 1 : index
    %c0_16 = arith.constant 0 : index
    %c0_17 = arith.constant 0 : index
    %15 = vector.load %arg5[%c1_15, %c0_16, %c0_17] : memref<9x1x128xf32, #tpu.memory_space<vmem>>, vector<1x1x128xf32>
    %16 = vector.shape_cast %15 : vector<1x1x128xf32> to vector<1x128xf32>
    %17 = vector.broadcast %16 : vector<1x128xf32> to vector<128x128xf32>
    %18 = arith.addf %14, %17 : vector<128x128xf32>
    %c2 = arith.constant 2 : index
    %c0_18 = arith.constant 0 : index
    %c0_19 = arith.constant 0 : index
    %19 = vector.load %arg4[%c2, %c0_18, %c0_19] : memref<9x128x128xbf16, #tpu.memory_space<vmem>>, vector<1x128x128xbf16>
    %20 = vector.shape_cast %19 : vector<1x128x128xbf16> to vector<128x128xbf16>
    %cst_20 = arith.constant dense<0.000000e+00> : vector<128x128xf32>
    %21 = tpu.matmul %2, %20, %cst_20 {dimension_numbers = #tpu.dot_dimension_numbers<[1], [0], [0], [1], [0, 0, 1, 1], [], []>} : vector<128x128xbf16>, vector<128x128xbf16>, vector<128x128xf32> -> vector<128x128xf32>
    %22 = arith.truncf %21 : vector<128x128xf32> to vector<128x128xbf16>
    %cst_21 = arith.constant dense<0.000000e+00> : vector<128x128xf32>
    %23 = tpu.matmul %1, %22, %cst_21 {dimension_numbers = #tpu.dot_dimension_numbers<[1], [0], [0], [1], [0, 0, 1, 1], [], []>} : vector<128x128xbf16>, vector<128x128xbf16>, vector<128x128xf32> -> vector<128x128xf32>
    %c2_22 = arith.constant 2 : index
    %c0_23 = arith.constant 0 : index
    %c0_24 = arith.constant 0 : index
    %24 = vector.load %arg5[%c2_22, %c0_23, %c0_24] : memref<9x1x128xf32, #tpu.memory_space<vmem>>, vector<1x1x128xf32>
    %25 = vector.shape_cast %24 : vector<1x1x128xf32> to vector<1x128xf32>
    %26 = vector.broadcast %25 : vector<1x128xf32> to vector<128x128xf32>
    %27 = arith.addf %23, %26 : vector<128x128xf32>
    %28 = arith.addf %9, %18 : vector<128x128xf32>
    %29 = arith.addf %28, %27 : vector<128x128xf32>
    %30 = arith.truncf %29 : vector<128x128xf32> to vector<128x128xbf16>
    %c3 = arith.constant 3 : index
    %c0_25 = arith.constant 0 : index
    %c0_26 = arith.constant 0 : index
    %31 = vector.load %arg4[%c3, %c0_25, %c0_26] : memref<9x128x128xbf16, #tpu.memory_space<vmem>>, vector<1x128x128xbf16>
    %32 = vector.shape_cast %31 : vector<1x128x128xbf16> to vector<128x128xbf16>
    %cst_27 = arith.constant dense<0.000000e+00> : vector<128x128xf32>
    %33 = tpu.matmul %30, %32, %cst_27 {dimension_numbers = #tpu.dot_dimension_numbers<[1], [0], [0], [1], [0, 0, 1, 1], [], []>} : vector<128x128xbf16>, vector<128x128xbf16>, vector<128x128xf32> -> vector<128x128xf32>
    %c3_28 = arith.constant 3 : index
    %c0_29 = arith.constant 0 : index
    %c0_30 = arith.constant 0 : index
    %34 = vector.load %arg5[%c3_28, %c0_29, %c0_30] : memref<9x1x128xf32, #tpu.memory_space<vmem>>, vector<1x1x128xf32>
    %35 = vector.shape_cast %34 : vector<1x1x128xf32> to vector<1x128xf32>
    %36 = vector.broadcast %35 : vector<1x128xf32> to vector<128x128xf32>
    %37 = arith.addf %33, %36 : vector<128x128xf32>
    %c4 = arith.constant 4 : index
    %c0_31 = arith.constant 0 : index
    %c0_32 = arith.constant 0 : index
    %38 = vector.load %arg4[%c4, %c0_31, %c0_32] : memref<9x128x128xbf16, #tpu.memory_space<vmem>>, vector<1x128x128xbf16>
    %39 = vector.shape_cast %38 : vector<1x128x128xbf16> to vector<128x128xbf16>
    %cst_33 = arith.constant dense<0.000000e+00> : vector<128x128xf32>
    %40 = tpu.matmul %30, %39, %cst_33 {dimension_numbers = #tpu.dot_dimension_numbers<[1], [0], [0], [1], [0, 0, 1, 1], [], []>} : vector<128x128xbf16>, vector<128x128xbf16>, vector<128x128xf32> -> vector<128x128xf32>
    %41 = arith.truncf %40 : vector<128x128xf32> to vector<128x128xbf16>
    %cst_34 = arith.constant dense<0.000000e+00> : vector<128x128xf32>
    %42 = tpu.matmul %0, %41, %cst_34 {dimension_numbers = #tpu.dot_dimension_numbers<[1], [0], [0], [1], [0, 0, 1, 1], [], []>} : vector<128x128xbf16>, vector<128x128xbf16>, vector<128x128xf32> -> vector<128x128xf32>
    %c4_35 = arith.constant 4 : index
    %c0_36 = arith.constant 0 : index
    %c0_37 = arith.constant 0 : index
    %43 = vector.load %arg5[%c4_35, %c0_36, %c0_37] : memref<9x1x128xf32, #tpu.memory_space<vmem>>, vector<1x1x128xf32>
    %44 = vector.shape_cast %43 : vector<1x1x128xf32> to vector<1x128xf32>
    %45 = vector.broadcast %44 : vector<1x128xf32> to vector<128x128xf32>
    %46 = arith.addf %42, %45 : vector<128x128xf32>
    %c5 = arith.constant 5 : index
    %c0_38 = arith.constant 0 : index
    %c0_39 = arith.constant 0 : index
    %47 = vector.load %arg4[%c5, %c0_38, %c0_39] : memref<9x128x128xbf16, #tpu.memory_space<vmem>>, vector<1x128x128xbf16>
    %48 = vector.shape_cast %47 : vector<1x128x128xbf16> to vector<128x128xbf16>
    %cst_40 = arith.constant dense<0.000000e+00> : vector<128x128xf32>
    %49 = tpu.matmul %30, %48, %cst_40 {dimension_numbers = #tpu.dot_dimension_numbers<[1], [0], [0], [1], [0, 0, 1, 1], [], []>} : vector<128x128xbf16>, vector<128x128xbf16>, vector<128x128xf32> -> vector<128x128xf32>
    %50 = arith.truncf %49 : vector<128x128xf32> to vector<128x128xbf16>
    %cst_41 = arith.constant dense<0.000000e+00> : vector<128x128xf32>
    %51 = tpu.matmul %1, %50, %cst_41 {dimension_numbers = #tpu.dot_dimension_numbers<[1], [0], [0], [1], [0, 0, 1, 1], [], []>} : vector<128x128xbf16>, vector<128x128xbf16>, vector<128x128xf32> -> vector<128x128xf32>
    %c5_42 = arith.constant 5 : index
    %c0_43 = arith.constant 0 : index
    %c0_44 = arith.constant 0 : index
    %52 = vector.load %arg5[%c5_42, %c0_43, %c0_44] : memref<9x1x128xf32, #tpu.memory_space<vmem>>, vector<1x1x128xf32>
    %53 = vector.shape_cast %52 : vector<1x1x128xf32> to vector<1x128xf32>
    %54 = vector.broadcast %53 : vector<1x128xf32> to vector<128x128xf32>
    %55 = arith.addf %51, %54 : vector<128x128xf32>
    %56 = arith.addf %37, %46 : vector<128x128xf32>
    %57 = arith.addf %56, %55 : vector<128x128xf32>
    %58 = arith.truncf %57 : vector<128x128xf32> to vector<128x128xbf16>
    %c6 = arith.constant 6 : index
    %c0_45 = arith.constant 0 : index
    %c0_46 = arith.constant 0 : index
    %59 = vector.load %arg4[%c6, %c0_45, %c0_46] : memref<9x128x128xbf16, #tpu.memory_space<vmem>>, vector<1x128x128xbf16>
    %60 = vector.shape_cast %59 : vector<1x128x128xbf16> to vector<128x128xbf16>
    %cst_47 = arith.constant dense<0.000000e+00> : vector<128x128xf32>
    %61 = tpu.matmul %58, %60, %cst_47 {dimension_numbers = #tpu.dot_dimension_numbers<[1], [0], [0], [1], [0, 0, 1, 1], [], []>} : vector<128x128xbf16>, vector<128x128xbf16>, vector<128x128xf32> -> vector<128x128xf32>
    %c6_48 = arith.constant 6 : index
    %c0_49 = arith.constant 0 : index
    %c0_50 = arith.constant 0 : index
    %62 = vector.load %arg5[%c6_48, %c0_49, %c0_50] : memref<9x1x128xf32, #tpu.memory_space<vmem>>, vector<1x1x128xf32>
    %63 = vector.shape_cast %62 : vector<1x1x128xf32> to vector<1x128xf32>
    %64 = vector.broadcast %63 : vector<1x128xf32> to vector<128x128xf32>
    %65 = arith.addf %61, %64 : vector<128x128xf32>
    %c7 = arith.constant 7 : index
    %c0_51 = arith.constant 0 : index
    %c0_52 = arith.constant 0 : index
    %66 = vector.load %arg4[%c7, %c0_51, %c0_52] : memref<9x128x128xbf16, #tpu.memory_space<vmem>>, vector<1x128x128xbf16>
    %67 = vector.shape_cast %66 : vector<1x128x128xbf16> to vector<128x128xbf16>
    %cst_53 = arith.constant dense<0.000000e+00> : vector<128x128xf32>
    %68 = tpu.matmul %58, %67, %cst_53 {dimension_numbers = #tpu.dot_dimension_numbers<[1], [0], [0], [1], [0, 0, 1, 1], [], []>} : vector<128x128xbf16>, vector<128x128xbf16>, vector<128x128xf32> -> vector<128x128xf32>
    %69 = arith.truncf %68 : vector<128x128xf32> to vector<128x128xbf16>
    %cst_54 = arith.constant dense<0.000000e+00> : vector<128x128xf32>
    %70 = tpu.matmul %0, %69, %cst_54 {dimension_numbers = #tpu.dot_dimension_numbers<[1], [0], [0], [1], [0, 0, 1, 1], [], []>} : vector<128x128xbf16>, vector<128x128xbf16>, vector<128x128xf32> -> vector<128x128xf32>
    %c7_55 = arith.constant 7 : index
    %c0_56 = arith.constant 0 : index
    %c0_57 = arith.constant 0 : index
    %71 = vector.load %arg5[%c7_55, %c0_56, %c0_57] : memref<9x1x128xf32, #tpu.memory_space<vmem>>, vector<1x1x128xf32>
    %72 = vector.shape_cast %71 : vector<1x1x128xf32> to vector<1x128xf32>
    %73 = vector.broadcast %72 : vector<1x128xf32> to vector<128x128xf32>
    %74 = arith.addf %70, %73 : vector<128x128xf32>
    %c8 = arith.constant 8 : index
    %c0_58 = arith.constant 0 : index
    %c0_59 = arith.constant 0 : index
    %75 = vector.load %arg4[%c8, %c0_58, %c0_59] : memref<9x128x128xbf16, #tpu.memory_space<vmem>>, vector<1x128x128xbf16>
    %76 = vector.shape_cast %75 : vector<1x128x128xbf16> to vector<128x128xbf16>
    %cst_60 = arith.constant dense<0.000000e+00> : vector<128x128xf32>
    %77 = tpu.matmul %58, %76, %cst_60 {dimension_numbers = #tpu.dot_dimension_numbers<[1], [0], [0], [1], [0, 0, 1, 1], [], []>} : vector<128x128xbf16>, vector<128x128xbf16>, vector<128x128xf32> -> vector<128x128xf32>
    %78 = arith.truncf %77 : vector<128x128xf32> to vector<128x128xbf16>
    %cst_61 = arith.constant dense<0.000000e+00> : vector<128x128xf32>
    %79 = tpu.matmul %1, %78, %cst_61 {dimension_numbers = #tpu.dot_dimension_numbers<[1], [0], [0], [1], [0, 0, 1, 1], [], []>} : vector<128x128xbf16>, vector<128x128xbf16>, vector<128x128xf32> -> vector<128x128xf32>
    %c8_62 = arith.constant 8 : index
    %c0_63 = arith.constant 0 : index
    %c0_64 = arith.constant 0 : index
    %80 = vector.load %arg5[%c8_62, %c0_63, %c0_64] : memref<9x1x128xf32, #tpu.memory_space<vmem>>, vector<1x1x128xf32>
    %81 = vector.shape_cast %80 : vector<1x1x128xf32> to vector<1x128xf32>
    %82 = vector.broadcast %81 : vector<1x128xf32> to vector<128x128xf32>
    %83 = arith.addf %79, %82 : vector<128x128xf32>
    %84 = arith.addf %65, %74 : vector<128x128xf32>
    %85 = arith.addf %84, %83 : vector<128x128xf32>
    %86 = tpu.iota {dimensions = array<i32: 1>} : vector<1x128xi32>
    %c8_i32 = arith.constant 8 : i32
    %87 = vector.broadcast %c8_i32 : i32 to vector<1x128xi32>
    %88 = arith.cmpi slt, %86, %87 : vector<1x128xi32>
    %cst_65 = arith.constant 0.000000e+00 : f32
    %cst_66 = arith.constant -1.000000e+30 : f32
    %89 = vector.broadcast %cst_65 : f32 to vector<1x128xf32>
    %90 = vector.broadcast %cst_66 : f32 to vector<1x128xf32>
    %91 = arith.select %88, %89, %90 : vector<1x128xi1>, vector<1x128xf32>
    %92 = vector.broadcast %91 : vector<1x128xf32> to vector<128x128xf32>
    %93 = arith.addf %85, %92 : vector<128x128xf32>
    %cst_67 = arith.constant dense<0xFF800000> : vector<128xf32>
    %94 = vector.multi_reduction <maximumf>, %93, %cst_67 [1] : vector<128x128xf32> to vector<128xf32>
    %95 = vector.shape_cast %94 : vector<128xf32> to vector<128x1xf32>
    %96 = vector.broadcast %95 : vector<128x1xf32> to vector<128x128xf32>
    %97 = arith.subf %93, %96 : vector<128x128xf32>
    %98 = math.exp %97 : vector<128x128xf32>
    %cst_68 = arith.constant dense<0.000000e+00> : vector<128xf32>
    %99 = vector.multi_reduction <add>, %98, %cst_68 [1] : vector<128x128xf32> to vector<128xf32>
    %100 = vector.shape_cast %99 : vector<128xf32> to vector<128x1xf32>
    %101 = math.log %100 : vector<128x1xf32>
    %102 = vector.broadcast %101 : vector<128x1xf32> to vector<128x128xf32>
    %103 = arith.subf %97, %102 : vector<128x128xf32>
    %c0_69 = arith.constant 0 : index
    %c0_70 = arith.constant 0 : index
    %104 = vector.load %arg6[%c0_69, %c0_70] : memref<128x128xf32, #tpu.memory_space<vmem>>, vector<128x128xf32>
    tpu.vector_store %arg6[%c0_69, %c0_70], %103 {strides = array<i32>} : memref<128x128xf32, #tpu.memory_space<vmem>>, vector<128x128xf32>,
    return
  }
  func.func @transform_0(%arg0: i32) -> (i32, i32) {
    %c0_i32 = arith.constant 0 : i32
    %c0_i32_0 = arith.constant 0 : i32
    %c0_i32_1 = arith.constant 0 : i32
    return %c0_i32, %c0_i32_0 : i32, i32
  }
  func.func @transform_1(%arg0: i32) -> (i32, i32) {
    %c0_i32 = arith.constant 0 : i32
    %c0_i32_0 = arith.constant 0 : i32
    %c0_i32_1 = arith.constant 0 : i32
    return %c0_i32, %c0_i32_0 : i32, i32
  }
  func.func @transform_2(%arg0: i32) -> (i32, i32) {
    %c0_i32 = arith.constant 0 : i32
    %c0_i32_0 = arith.constant 0 : i32
    %c0_i32_1 = arith.constant 0 : i32
    return %c0_i32, %c0_i32_0 : i32, i32
  }
  func.func @transform_3(%arg0: i32) -> (i32, i32, i32) {
    %c0_i32 = arith.constant 0 : i32
    %c0_i32_0 = arith.constant 0 : i32
    %c0_i32_1 = arith.constant 0 : i32
    %c0_i32_2 = arith.constant 0 : i32
    return %c0_i32, %c0_i32_0, %c0_i32_1 : i32, i32, i32
  }
  func.func @transform_4(%arg0: i32) -> (i32, i32, i32) {
    %c0_i32 = arith.constant 0 : i32
    %c0_i32_0 = arith.constant 0 : i32
    %c0_i32_1 = arith.constant 0 : i32
    %c0_i32_2 = arith.constant 0 : i32
    return %c0_i32, %c0_i32_0, %c0_i32_1 : i32, i32, i32
  }
  func.func @transform_5(%arg0: i32) -> (i32, i32) {
    %c0_i32 = arith.constant 0 : i32
    %c0_i32_0 = arith.constant 0 : i32
    %c0_i32_1 = arith.constant 0 : i32
    return %c0_i32, %c0_i32_0 : i32, i32
  }
}

</mosaic_0001>

<bundles_post_ra>
// kernel: digcn_inception_forward.1
= control target key start
LH: loop header
LB: loop body
LE: loop exit
PB: predicated region body
PF: predicated region fallthrough
CT: control target
= control target key end

     0   :  { %s4698_s3 = inlined_call_operand.vmem [shape: bf16[9,128,128], index: 3, kind: input, shape index: {}]   ;;  %s4699_s0 = inlined_call_operand.vmem [shape: bf16[128,128], index: 0, kind: input, shape index: {}]   ;;  %s4700_s1 = inlined_call_operand.vmem [shape: bf16[128,128], index: 1, kind: input, shape index: {}]   ;;  %s4701_s2 = inlined_call_operand.vmem [shape: bf16[128,128], index: 2, kind: input, shape index: {}]   ;;  %s4702_s4 = inlined_call_operand.vmem [shape: f32[9,1,128], index: 4, kind: input, shape index: {}]   ;;  %s4703_s5 = inlined_call_operand.vmem [shape: f32[128,128], index: 5, kind: output, shape index: {}]  }
   0x1   :  { %v3901_v0 = vld [vmem:[%s4698_s3 + $0x40] sm:$0xff]   ;;  %v3902_v1 = vld [vmem:[%s4698_s3 + $0x48] sm:$0xff]   ;;  %v3903_v2 = vld [vmem:[%s4698_s3 + $0x50] sm:$0xff]  }
   0x2   :  { %3196 = vmatprep.subr.bf16.mxu1 %v3901_v0  ;;  %v3904_v3 = vld [vmem:[%s4698_s3 + $0x58] sm:$0xff]   ;;  %v4108_v4 = vld [vmem:[%s4699_s0] sm:$0xff]   ;;  %v3906_v6 = vld [vmem:[%s4698_s3 + $0x68] sm:$0xff]  }
   0x3   :  { %3197 = vmatpush3.bf16.msra.mxu1 %v3901_v0  ;;  %3212 = vmatprep.mubr.bf16.mxu1 %v4108_v4  ;;  %v3905_v5 = vld [vmem:[%s4698_s3 + $0x60] sm:$0xff]   ;;  %v3907_v7 = vld [vmem:[%s4698_s3 + $0x70] sm:$0xff]   ;;  %v3908_v8 = vld [vmem:[%s4698_s3 + $0x78] sm:$0xff]  }
   0x4   :  { %3198 = vmatprep.subr.bf16.mxu1 %v3902_v1  ;;  %3180 = vmatprep.mubr.bf16.mxu0 %v4108_v4  ;;  %v3925_v9 = vld [vmem:[%s4698_s3] sm:$0xff]   ;;  %v3926_v10 = vld [vmem:[%s4698_s3 + $0x8] sm:$0xff]   ;;  %v3927_v12 = vld [vmem:[%s4698_s3 + $0x10] sm:$0xff]  }
   0x5   :  { %3164 = vmatprep.subr.bf16.mxu0 %v3925_v9  ;;  %v3911_v11 = vld [vmem:[%s4698_s3 + $0x80] sm:$0xff]   ;;  %v4139_v13 = vld [vmem:[%s4699_s0 + $0x8] sm:$0xff]   ;;  %v3913_v15 = vld [vmem:[%s4699_s0 + $0x10] sm:$0xff]  }
   0x6   :  { %3165 = vmatpush3.bf16.msra.mxu0 %v3925_v9  ;;  %v3912_v14 = vld [vmem:[%s4698_s3 + $0x88] sm:$0xff]   ;;  %v3928_v16 = vld [vmem:[%s4698_s3 + $0x18] sm:$0xff]   ;;  %v3915_v17 = vld [vmem:[%s4698_s3 + $0x90] sm:$0xff]  }
   0x7   :  { %3199 = vmatpush3.bf16.msra.mxu1 %v3902_v1  ;;  %3166 = vmatprep.subr.bf16.mxu0 %v3926_v10  ;;  %v3929_v18 = vld [vmem:[%s4698_s3 + $0x20] sm:$0xff]   ;;  %v3914_v19 = vld [vmem:[%s4699_s0 + $0x18] sm:$0xff]   ;;  %v3930_v22 = vld [vmem:[%s4698_s3 + $0x28] sm:$0xff]  }
   0x8   :  { %3200 = vmatprep.subr.bf16.mxu1 %v3903_v2  ;;  %v3917_v20 = vld [vmem:[%s4699_s0 + $0x20] sm:$0xff]   ;;  %v3916_v21 = vld [vmem:[%s4698_s3 + $0x98] sm:$0xff]   ;;  %v3931_v24 = vld [vmem:[%s4698_s3 + $0x30] sm:$0xff]  }
   0x9   :  { %v3919_v23 = vld [vmem:[%s4698_s3 + $0xa0] sm:$0xff]   ;;  %v3918_v25 = vld [vmem:[%s4699_s0 + $0x28] sm:$0xff]   ;;  %v3921_v26 = vld [vmem:[%s4699_s0 + $0x30] sm:$0xff]  }
   0xa   :  { %3167 = vmatpush3.bf16.msra.mxu0 %v3926_v10  ;;  %v3920_v27 = vld [vmem:[%s4698_s3 + $0xa8] sm:$0xff]   ;;  %v3923_v28 = vld [vmem:[%s4698_s3 + $0xb0] sm:$0xff]   ;;  %v3922_v29 = vld [vmem:[%s4699_s0 + $0x38] sm:$0xff]  }
   0xb   :  { %3201 = vmatpush3.bf16.msra.mxu1 %v3903_v2  ;;  %3168 = vmatprep.subr.bf16.mxu0 %v3927_v12  ;;  %v3924_v30 = vld [vmem:[%s4698_s3 + $0xb8] sm:$0xff]   ;;  %v4202_v32 = vld [vmem:[%s4700_s1] sm:$0xff]   ;;  %v3951_v34 = vld [vmem:[%s4698_s3 + $0xc8] sm:$0xff]  }
   0xc   :  { %3202 = vmatprep.subr.bf16.mxu1 %v3904_v3  ;;  %v3932_v31 = vld [vmem:[%s4698_s3 + $0x38] sm:$0xff]   ;;  %v3949_v33 = vld [vmem:[%s4698_s3 + $0xc0] sm:$0xff]   ;;  %v3953_v35 = vld [vmem:[%s4698_s3 + $0xd0] sm:$0xff]  }
   0xd   :  { %v3955_v36 = vld [vmem:[%s4698_s3 + $0xd8] sm:$0xff]   ;;  %v3957_v37 = vld [vmem:[%s4698_s3 + $0xe0] sm:$0xff]   ;;  %v3959_v38 = vld [vmem:[%s4698_s3 + $0xe8] sm:$0xff]  }
   0xe   :  { %3169 = vmatpush3.bf16.msra.mxu0 %v3927_v12  ;;  %v4226_v2 = vld [vmem:[%s4700_s1 + $0x8] sm:$0xff]   ;;  %v4238_v10 = vld [vmem:[%s4700_s1 + $0x18] sm:$0xff]  }
   0xf   :  { %3203 = vmatpush3.bf16.msra.mxu1 %v3904_v3  ;;  %3170 = vmatprep.subr.bf16.mxu0 %v3928_v16 }
  0x10   :  { %3204 = vmatprep.subr.bf16.mxu1 %v3905_v5 }
  0x12   :  { %3171 = vmatpush3.bf16.msra.mxu0 %v3928_v16 }
  0x13   :  { %3205 = vmatpush3.bf16.msra.mxu1 %v3905_v5  ;;  %3172 = vmatprep.subr.bf16.mxu0 %v3929_v18  ;;  %v4231_v5 = vld [vmem:[%s4700_s1 + $0x10] sm:$0xff]  }
  0x14   :  { %3206 = vmatprep.subr.bf16.mxu1 %v3906_v6 }
  0x16   :  { %3173 = vmatpush3.bf16.msra.mxu0 %v3929_v18  ;;  %v4250_v18 = vld [vmem:[%s4700_s1 + $0x28] sm:$0xff]  }
  0x17   :  { %3207 = vmatpush3.bf16.msra.mxu1 %v3906_v6  ;;  %3174 = vmatprep.subr.bf16.mxu0 %v3930_v22 }
  0x18   :  { %3208 = vmatprep.subr.bf16.mxu1 %v3907_v7 }
  0x1a   :  { %3175 = vmatpush3.bf16.msra.mxu0 %v3930_v22 }
  0x1b   :  { %3209 = vmatpush3.bf16.msra.mxu1 %v3907_v7  ;;  %3176 = vmatprep.subr.bf16.mxu0 %v3931_v24 }
  0x1c   :  { %3210 = vmatprep.subr.bf16.mxu1 %v3908_v8 }
  0x1e   :  { %3177 = vmatpush3.bf16.msra.mxu0 %v3931_v24 }
  0x1f   :  { %3211 = vmatpush3.bf16.msra.mxu1 %v3908_v8  ;;  %3178 = vmatprep.subr.bf16.mxu0 %v3932_v31 }
  0x20   :  { %3260 = vmatprep.subr.bf16.mxu1 %v3911_v11 }
  0x22   :  { %3213 = vmatmul.mubr.bf16.vlgmr.msra.gmra.mrb[0].mxu1 %v4139_v13  ;;  %3179 = vmatpush3.bf16.msra.mxu0 %v3932_v31  ;;  %v3950_v31 = vld [vmem:[%s4698_s3 + $0x100] sm:$0xff]  }
  0x23   :  { %3261 = vmatpush3.bf16.msra.mxu1 %v3911_v11  ;;  %3216 = vmatprep.mubr.bf16.mxu1 %v3913_v15 }
  0x24   :  { %3262 = vmatprep.subr.bf16.mxu1 %v3912_v14 }
  0x25   :  { %3181 = vmatmul.mubr.bf16.vlgmr.msra.gmra.mrb[0].mxu0 %v4139_v13 }
  0x26   :  { %3184 = vmatprep.mubr.bf16.mxu0 %v3913_v15 }
  0x27   :  { %3263 = vmatpush3.bf16.msra.mxu1 %v3912_v14 }
  0x28   :  { %3264 = vmatprep.subr.bf16.mxu1 %v3915_v17 }
  0x2a   :  { %3217 = vmatmul.mubr.bf16.gmra.mrb[4].mxu1 %v3914_v19 }
  0x2b   :  { %3265 = vmatpush3.bf16.msra.mxu1 %v3915_v17  ;;  %3220 = vmatprep.mubr.bf16.mxu1 %v3917_v20 }
  0x2c   :  { %3266 = vmatprep.subr.bf16.mxu1 %v3916_v21 }
  0x2d   :  { %3185 = vmatmul.mubr.bf16.gmra.mrb[4].mxu0 %v3914_v19 }
  0x2e   :  { %3188 = vmatprep.mubr.bf16.mxu0 %v3917_v20 }
  0x2f   :  { %3267 = vmatpush3.bf16.msra.mxu1 %v3916_v21  ;;  %v4255_v21 = vld [vmem:[%s4700_s1 + $0x30] sm:$0xff]  }
  0x30   :  { %3268 = vmatprep.subr.bf16.mxu1 %v3919_v23 }
  0x32   :  { %3221 = vmatmul.mubr.bf16.gmra.mrb[8].mxu1 %v3918_v25 }
  0x33   :  { %3269 = vmatpush3.bf16.msra.mxu1 %v3919_v23  ;;  %3224 = vmatprep.mubr.bf16.mxu1 %v3921_v26 }
  0x34   :  { %3270 = vmatprep.subr.bf16.mxu1 %v3920_v27 }
  0x35   :  { %3189 = vmatmul.mubr.bf16.gmra.mrb[8].mxu0 %v3918_v25 }
  0x36   :  { %3192 = vmatprep.mubr.bf16.mxu0 %v3921_v26 }
  0x37   :  { %3271 = vmatpush3.bf16.msra.mxu1 %v3920_v27 }
  0x38   :  { %3272 = vmatprep.subr.bf16.mxu1 %v3923_v28 }
  0x3a   :  { %3225 = vmatmul.mubr.bf16.gmra.mrb[12].mxu1 %v3922_v29 }
  0x3b   :  { %3273 = vmatpush3.bf16.msra.mxu1 %v3923_v28  ;;  %3276 = vmatprep.mubr.bf16.mxu1 %v4108_v4 }
  0x3c   :  { %3274 = vmatprep.subr.bf16.mxu1 %v3924_v30 }
  0x3d   :  { %3193 = vmatmul.mubr.bf16.gmra.mrb[12].mxu0 %v3922_v29 }
  0x3e   :  { %3244 = vmatprep.mubr.bf16.mxu0 %v4202_v32 }
  0x3f   :  { %3275 = vmatpush3.bf16.msra.mxu1 %v3924_v30 }
  0x40   :  { %3324 = vmatprep.subr.bf16.mxu1 %v3949_v33 }
  0x42   :  { %3277 = vmatmul.mubr.bf16.vlgmr.msra.gmra.mrb[16].mxu1 %v4139_v13  ;;  %v4243_v13 = vld [vmem:[%s4700_s1 + $0x20] sm:$0xff]  }
  0x43   :  { %3280 = vmatprep.mubr.bf16.mxu1 %v3913_v15  ;;  %3325 = vmatpush3.bf16.msra.mxu1 %v3949_v33  ;;  %v4277_v33 = vld [vmem:[%s4701_s2 + $0x8] sm:$0xff]  }
  0x44   :  { %3326 = vmatprep.subr.bf16.mxu1 %v3951_v34 }
  0x47   :  { %3327 = vmatpush3.bf16.msra.mxu1 %v3951_v34  ;;  %v4282_v34 = vld [vmem:[%s4701_s2 + $0x10] sm:$0xff]  }
  0x48   :  { %3328 = vmatprep.subr.bf16.mxu1 %v3953_v35 }
  0x4a   :  { %3281 = vmatmul.mubr.bf16.gmra.mrb[20].mxu1 %v3914_v19 }
  0x4b   :  { %3284 = vmatprep.mubr.bf16.mxu1 %v3917_v20  ;;  %3329 = vmatpush3.bf16.msra.mxu1 %v3953_v35  ;;  %v3952_v35 = vld [vmem:[%s4698_s3 + $0x108] sm:$0xff]  }
  0x4c   :  { %3330 = vmatprep.subr.bf16.mxu1 %v3955_v36 }
  0x4f   :  { %3331 = vmatpush3.bf16.msra.mxu1 %v3955_v36  ;;  %v3954_v36 = vld [vmem:[%s4698_s3 + $0x110] sm:$0xff]  }
  0x50   :  { %3332 = vmatprep.subr.bf16.mxu1 %v3957_v37 }
  0x52   :  { %3285 = vmatmul.mubr.bf16.gmra.mrb[24].mxu1 %v3918_v25 }
  0x53   :  { %3288 = vmatprep.mubr.bf16.mxu1 %v3921_v26  ;;  %3333 = vmatpush3.bf16.msra.mxu1 %v3957_v37  ;;  %v4262_v26 = vld [vmem:[%s4700_s1 + $0x38] sm:$0xff]  }
  0x54   :  { %3334 = vmatprep.subr.bf16.mxu1 %v3959_v38  ;;  %v4295_v37 = vld [vmem:[%s4701_s2 + $0x18] sm:$0xff]  }
  0x57   :  { %3335 = vmatpush3.bf16.msra.mxu1 %v3959_v38  ;;  %v4300_v38 = vld [vmem:[%s4701_s2 + $0x20] sm:$0xff]  }
  0x5a   :  { %3289 = vmatmul.mubr.bf16.gmra.mrb[28].mxu1 %v3922_v29  ;;  %v4267_v29 = vld [vmem:[%s4701_s2] sm:$0xff]  }
  0xf5   :  { %v3214_v39 = vpop.f32.mrb[0].mxu1 }
  0xf6   :  { %v384_v40 = vpop.f32.mrb[1].mxu1 }
  0xf7   :  { %v3215_v41 = vpop.f32.mrb[2].mxu1 }
  0xf8   :  { %v448_v42 = vpack.c.bf16 %v3215_v41, %v3214_v39  ;;  %v387_v43 = vpop.f32.mrb[3].mxu1  ;;  %v3956_v39 = vld [vmem:[%s4698_s3 + $0x118] sm:$0xff]   ;;  %v4313_v41 = vld [vmem:[%s4701_s2 + $0x28] sm:$0xff]  }
  0xf9   :  { %v447_v44 = vpack.c.bf16 %v387_v43, %v384_v40  ;;  %v3958_v40 = vld [vmem:[%s4698_s3 + $0x120] sm:$0xff]   ;;  %v3960_v43 = vld [vmem:[%s4698_s3 + $0x128] sm:$0xff]  }
  0xfb   :  { %3228 = vmatprep.subr.bf16.mxu0 %v447_v44 }
  0xfc   :  { %3229 = vmatpush3.bf16.msra.mxu0 %v447_v44  ;;  %v4328_v44 = vld [vmem:[%s4701_s2 + $0x38] sm:$0xff]  }
  0xfd   :  { %v3218_v45 = vpop.f32.mrb[4].mxu1  ;;  %3230 = vmatprep.subr.bf16.mxu0 %v448_v42 }
  0xfe   :  { %v400_v46 = vpop.f32.mrb[5].mxu1 }
  0xff   :  { %v3219_v47 = vpop.f32.mrb[6].mxu1 }
 0x100   :  { %v450_v48 = vpack.c.bf16 %v3219_v47, %v3218_v45  ;;  %v403_v49 = vpop.f32.mrb[7].mxu1  ;;  %3231 = vmatpush3.bf16.msra.mxu0 %v448_v42  ;;  %v4318_v42 = vld [vmem:[%s4701_s2 + $0x30] sm:$0xff]   ;;  %v3963_v47 = vld [vmem:[%s4698_s3 + $0xf8] sm:$0xff]  }
 0x101   :  { %v449_v50 = vpack.c.bf16 %v403_v49, %v400_v46  ;;  %v3961_v45 = vld [vmem:[%s4698_s3 + $0xf0] sm:$0xff]   ;;  %v3965_v49 = vld [vmem:[%s4698_s3 + $0x140] sm:$0xff]  }
 0x102   :  { %v3962_v46 = vld [vmem:[%s4698_s3 + $0x130] sm:$0xff]   ;;  %3336 = vmatprep.subr.bf16.mxu1 %v3961_v45 }
 0x103   :  { %3232 = vmatprep.subr.bf16.mxu0 %v449_v50  ;;  %3337 = vmatpush3.bf16.msra.mxu1 %v3961_v45 }
 0x104   :  { %3233 = vmatpush3.bf16.msra.mxu0 %v449_v50  ;;  %3338 = vmatprep.subr.bf16.mxu1 %v3963_v47  ;;  %v2683_v50 = vld [vmem:[%s4702_s4] ss:$0 sm:$0xff] }
 0x105   :  { %v3222_v51 = vpop.f32.mrb[8].mxu1  ;;  %3234 = vmatprep.subr.bf16.mxu0 %v450_v48 }
 0x106   :  { %v416_v52 = vpop.f32.mrb[9].mxu1 }
 0x107   :  { %v3223_v53 = vpop.f32.mrb[10].mxu1  ;;  %3339 = vmatpush3.bf16.msra.mxu1 %v3963_v47 }
 0x108   :  { %v452_v54 = vpack.c.bf16 %v3223_v53, %v3222_v51  ;;  %v419_v55 = vpop.f32.mrb[11].mxu1  ;;  %3235 = vmatpush3.bf16.msra.mxu0 %v450_v48  ;;  %v3964_v48 = vld [vmem:[%s4698_s3 + $0x138] sm:$0xff]   ;;  %v2725_v51 = vld [vmem:[%s4702_s4 + $0x1] ss:$0 sm:$0xff]  ;;  %v2759_v53 = vld [vmem:[%s4702_s4 + $0x2] ss:$0 sm:$0xff] }
 0x109   :  { %v451_v56 = vpack.c.bf16 %v419_v55, %v416_v52  ;;  %v3663_v52 = vadd.f32 %v2725_v51, %v2683_v50  ;;  %v3971_v50 = vld [vmem:[%s4698_s3 + $0x170] sm:$0xff]  }
 0x10b   :  { %3236 = vmatprep.subr.bf16.mxu0 %v451_v56 }
 0x10c   :  { %3237 = vmatpush3.bf16.msra.mxu0 %v451_v56 }
 0x10d   :  { %v3226_v57 = vpop.f32.mrb[12].mxu1  ;;  %3238 = vmatprep.subr.bf16.mxu0 %v452_v54 }
 0x10e   :  { %v432_v58 = vpop.f32.mrb[13].mxu1 }
 0x10f   :  { %v3227_v59 = vpop.f32.mrb[14].mxu1 }
 0x110   :  { %v454_v60 = vpack.c.bf16 %v3227_v59, %v3226_v57  ;;  %v435_v61 = vpop.f32.mrb[15].mxu1  ;;  %3239 = vmatpush3.bf16.msra.mxu0 %v452_v54  ;;  %v4355_v54 = vadd.f32 %v3663_v52, %v2759_v53 }
 0x111   :  { %v453_v62 = vpack.c.bf16 %v435_v61, %v432_v58 }
 0x113   :  { %3240 = vmatprep.subr.bf16.mxu0 %v453_v62 }
 0x114   :  { %3241 = vmatpush3.bf16.msra.mxu0 %v453_v62 }
 0x115   :  { %3242 = vmatprep.subr.bf16.mxu0 %v454_v60  ;;  %v3278_v63 = vpop.f32.mrb[16].mxu1 }
 0x116   :  { %v707_v0 = vpop.f32.mrb[17].mxu1 }
 0x117   :  { %v3279_v1 = vpop.f32.mrb[18].mxu1 }
 0x118   :  { %v771_v3 = vpack.c.bf16 %v3279_v1, %v3278_v63  ;;  %3243 = vmatpush3.bf16.msra.mxu0 %v454_v60  ;;  %v710_v4 = vpop.f32.mrb[19].mxu1 }
 0x119   :  { %v770_v6 = vpack.c.bf16 %v710_v4, %v707_v0  ;;  %v3966_v4 = vld [vmem:[%s4698_s3 + $0x148] sm:$0xff]  }
 0x11b   :  { %3245 = vmatmul.mubr.bf16.vlgmr.msra.gmra.mrb[0].mxu0 %v4226_v2  ;;  %3292 = vmatprep.subr.bf16.mxu0 %v770_v6 }
 0x11c   :  { %3293 = vmatpush3.bf16.msra.mxu0 %v770_v6  ;;  %3248 = vmatprep.mubr.bf16.mxu0 %v4231_v5 }
 0x11d   :  { %v3282_v7 = vpop.f32.mrb[20].mxu1  ;;  %3294 = vmatprep.subr.bf16.mxu0 %v771_v3 }
 0x11e   :  { %v723_v8 = vpop.f32.mrb[21].mxu1 }
 0x11f   :  { %v3283_v9 = vpop.f32.mrb[22].mxu1 }
 0x120   :  { %v773_v11 = vpack.c.bf16 %v3283_v9, %v3282_v7  ;;  %v726_v12 = vpop.f32.mrb[23].mxu1  ;;  %3295 = vmatpush3.bf16.msra.mxu0 %v771_v3 }
 0x121   :  { %v772_v14 = vpack.c.bf16 %v726_v12, %v723_v8 }
 0x123   :  { %3249 = vmatmul.mubr.bf16.gmra.mrb[4].mxu0 %v4238_v10  ;;  %3296 = vmatprep.subr.bf16.mxu0 %v772_v14 }
 0x124   :  { %3297 = vmatpush3.bf16.msra.mxu0 %v772_v14  ;;  %3252 = vmatprep.mubr.bf16.mxu0 %v4243_v13  ;;  %v3967_v14 = vld [vmem:[%s4698_s3 + $0x150] sm:$0xff]  }
 0x125   :  { %v3286_v15 = vpop.f32.mrb[24].mxu1  ;;  %3298 = vmatprep.subr.bf16.mxu0 %v773_v11 }
 0x126   :  { %v739_v16 = vpop.f32.mrb[25].mxu1 }
 0x127   :  { %v3287_v17 = vpop.f32.mrb[26].mxu1 }
 0x128   :  { %v775_v19 = vpack.c.bf16 %v3287_v17, %v3286_v15  ;;  %v742_v20 = vpop.f32.mrb[27].mxu1  ;;  %3299 = vmatpush3.bf16.msra.mxu0 %v773_v11 }
 0x129   :  { %v774_v22 = vpack.c.bf16 %v742_v20, %v739_v16  ;;  %v3968_v20 = vld [vmem:[%s4698_s3 + $0x158] sm:$0xff]  }
 0x12b   :  { %3253 = vmatmul.mubr.bf16.gmra.mrb[8].mxu0 %v4250_v18  ;;  %3300 = vmatprep.subr.bf16.mxu0 %v774_v22 }
 0x12c   :  { %3301 = vmatpush3.bf16.msra.mxu0 %v774_v22  ;;  %3256 = vmatprep.mubr.bf16.mxu0 %v4255_v21 }
 0x12d   :  { %v3290_v23 = vpop.f32.mrb[28].mxu1  ;;  %3302 = vmatprep.subr.bf16.mxu0 %v775_v19 }
 0x12e   :  { %v755_v24 = vpop.f32.mrb[29].mxu1 }
 0x12f   :  { %v3291_v25 = vpop.f32.mrb[30].mxu1 }
 0x130   :  { %v777_v27 = vpack.c.bf16 %v3291_v25, %v3290_v23  ;;  %v758_v28 = vpop.f32.mrb[31].mxu1  ;;  %3303 = vmatpush3.bf16.msra.mxu0 %v775_v19 }
 0x131   :  { %v776_v30 = vpack.c.bf16 %v758_v28, %v755_v24 }
 0x133   :  { %3257 = vmatmul.mubr.bf16.gmra.mrb[12].mxu0 %v4262_v26  ;;  %3304 = vmatprep.subr.bf16.mxu0 %v776_v30 }
 0x134   :  { %3305 = vmatpush3.bf16.msra.mxu0 %v776_v30  ;;  %3308 = vmatprep.mubr.bf16.mxu0 %v4267_v29  ;;  %v3969_v30 = vld [vmem:[%s4698_s3 + $0x160] sm:$0xff]  }
 0x135   :  { %3306 = vmatprep.subr.bf16.mxu0 %v777_v27 }
 0x138   :  { %3307 = vmatpush3.bf16.msra.mxu0 %v777_v27 }
 0x139   :  { %3356 = vmatprep.subr.bf16.mxu0 %v3950_v31 }
 0x13b   :  { %3309 = vmatmul.mubr.bf16.vlgmr.msra.gmra.mrb[0].mxu0 %v4277_v33 }
 0x13c   :  { %3312 = vmatprep.mubr.bf16.mxu0 %v4282_v34  ;;  %3357 = vmatpush3.bf16.msra.mxu0 %v3950_v31 }
 0x13d   :  { %3358 = vmatprep.subr.bf16.mxu0 %v3952_v35 }
 0x140   :  { %3359 = vmatpush3.bf16.msra.mxu0 %v3952_v35 }
 0x141   :  { %3360 = vmatprep.subr.bf16.mxu0 %v3954_v36 }
 0x143   :  { %3313 = vmatmul.mubr.bf16.gmra.mrb[4].mxu0 %v4295_v37 }
 0x144   :  { %3316 = vmatprep.mubr.bf16.mxu0 %v4300_v38  ;;  %3361 = vmatpush3.bf16.msra.mxu0 %v3954_v36 }
 0x145   :  { %3362 = vmatprep.subr.bf16.mxu0 %v3956_v39 }
 0x148   :  { %3363 = vmatpush3.bf16.msra.mxu0 %v3956_v39 }
 0x149   :  { %3364 = vmatprep.subr.bf16.mxu0 %v3958_v40 }
 0x14b   :  { %3317 = vmatmul.mubr.bf16.gmra.mrb[8].mxu0 %v4313_v41 }
 0x14c   :  { %3320 = vmatprep.mubr.bf16.mxu0 %v4318_v42  ;;  %3365 = vmatpush3.bf16.msra.mxu0 %v3958_v40  ;;  %v3970_v40 = vld [vmem:[%s4698_s3 + $0x168] sm:$0xff]  }
 0x14d   :  { %3366 = vmatprep.subr.bf16.mxu0 %v3960_v43 }
 0x150   :  { %3367 = vmatpush3.bf16.msra.mxu0 %v3960_v43 }
 0x151   :  { %3368 = vmatprep.subr.bf16.mxu0 %v3962_v46 }
 0x153   :  { %3321 = vmatmul.mubr.bf16.gmra.mrb[12].mxu0 %v4328_v44 }
 0x154   :  { %3369 = vmatpush3.bf16.msra.mxu0 %v3962_v46 }
 0x155   :  { %3370 = vmatprep.subr.bf16.mxu0 %v3964_v48 }
 0x158   :  { %3371 = vmatpush3.bf16.msra.mxu0 %v3964_v48 }
 0x159   :  { %3420 = vmatprep.subr.bf16.mxu0 %v3965_v49 }
 0x20e   :  { %v3310_v55 = vpop.f32.mrb[0].mxu0 }
 0x20f   :  { %v3661_v56 = vadd.f32 %v3663_v52, %v3310_v55  ;;  %v868_v57 = vpop.f32.mrb[1].mxu0 }
 0x210   :  { %v3664_v58 = vadd.f32 %v3663_v52, %v868_v57  ;;  %v3311_v59 = vpop.f32.mrb[2].mxu0  ;;  %v3975_v57 = vld [vmem:[%s4698_s3 + $0x188] sm:$0xff]  }
 0x211   :  { %v3662_v60 = vadd.f32 %v3661_v56, %v2759_v53  ;;  %v3668_v61 = vadd.f32 %v4355_v54, %v3311_v59  ;;  %v871_v62 = vpop.f32.mrb[3].mxu0  ;;  %v3972_v56 = vld [vmem:[%s4698_s3 + $0x178] sm:$0xff]   ;;  %v3981_v59 = vld [vmem:[%s4698_s3 + $0x1a0] sm:$0xff]  }
 0x212   :  { %v3665_v63 = vadd.f32 %v3664_v58, %v2759_v53  ;;  %v3671_v0 = vadd.f32 %v4355_v54, %v871_v62  ;;  %v3979_v58 = vld [vmem:[%s4698_s3 + $0x198] sm:$0xff]  }
 0x213   :  { %v4359_v1 = vpack.c.bf16 %v3668_v61, %v3662_v60  ;;  %v3983_v60 = vld [vmem:[%s4698_s3 + $0x1a8] sm:$0xff]  }
 0x214   :  { %v4361_v3 = vpack.c.bf16 %v3671_v0, %v3665_v63 }
 0x216   :  { %v3314_v6 = vpop.f32.mrb[4].mxu0  ;;  %3340 = vmatprep.mubr.bf16.mxu1 %v4361_v3  ;;  %3372 = vmatprep.mubr.bf16.mxu0 %v4361_v3 }
 0x217   :  { %v884_v7 = vpop.f32.mrb[5].mxu0  ;;  %3341 = vmatmul.mubr.bf16.vlgmr.msra.gmra.mrb[32].mxu1 %v4359_v1  ;;  %3373 = vmatmul.mubr.bf16.vlgmr.msra.gmra.mrb[16].mxu0 %v4359_v1  ;;  %v3674_v9 = vadd.f32 %v4355_v54, %v3314_v6 }
 0x218   :  { %v3315_v8 = vpop.f32.mrb[6].mxu0  ;;  %3421 = vmatpush3.bf16.msra.mxu0 %v3965_v49  ;;  %v3677_v15 = vadd.f32 %v4355_v54, %v884_v7 }
 0x219   :  { %v3680_v11 = vadd.f32 %v4355_v54, %v3315_v8  ;;  %v887_v12 = vpop.f32.mrb[7].mxu0  ;;  %3422 = vmatprep.subr.bf16.mxu0 %v3966_v4 }
 0x21a   :  { %v3683_v16 = vadd.f32 %v4355_v54, %v887_v12 }
 0x21b   :  { %v966_v17 = vpack.c.bf16 %v3680_v11, %v3674_v9 }
 0x21c   :  { %v965_v19 = vpack.c.bf16 %v3683_v16, %v3677_v15  ;;  %3423 = vmatpush3.bf16.msra.mxu0 %v3966_v4 }
 0x21d   :  { %3424 = vmatprep.subr.bf16.mxu0 %v3967_v14 }
 0x21e   :  { %v3318_v22 = vpop.f32.mrb[8].mxu0  ;;  %3344 = vmatprep.mubr.bf16.mxu1 %v965_v19  ;;  %3376 = vmatprep.mubr.bf16.mxu0 %v965_v19 }
 0x21f   :  { %v900_v23 = vpop.f32.mrb[9].mxu0  ;;  %3345 = vmatmul.mubr.bf16.gmra.mrb[36].mxu1 %v966_v17  ;;  %3377 = vmatmul.mubr.bf16.gmra.mrb[20].mxu0 %v966_v17  ;;  %v3686_v25 = vadd.f32 %v4355_v54, %v3318_v22 }
 0x220   :  { %v3319_v24 = vpop.f32.mrb[10].mxu0  ;;  %3425 = vmatpush3.bf16.msra.mxu0 %v3967_v14  ;;  %v3689_v31 = vadd.f32 %v4355_v54, %v900_v23 }
 0x221   :  { %v3692_v27 = vadd.f32 %v4355_v54, %v3319_v24  ;;  %v903_v28 = vpop.f32.mrb[11].mxu0  ;;  %3426 = vmatprep.subr.bf16.mxu0 %v3968_v20 }
 0x222   :  { %v3695_v35 = vadd.f32 %v4355_v54, %v903_v28 }
 0x223   :  { %v968_v36 = vpack.c.bf16 %v3692_v27, %v3686_v25 }
 0x224   :  { %v967_v39 = vpack.c.bf16 %v3695_v35, %v3689_v31  ;;  %3427 = vmatpush3.bf16.msra.mxu0 %v3968_v20 }
 0x225   :  { %3428 = vmatprep.subr.bf16.mxu0 %v3969_v30 }
 0x226   :  { %v3322_v43 = vpop.f32.mrb[12].mxu0  ;;  %3348 = vmatprep.mubr.bf16.mxu1 %v967_v39  ;;  %3380 = vmatprep.mubr.bf16.mxu0 %v967_v39 }
 0x227   :  { %v916_v45 = vpop.f32.mrb[13].mxu0  ;;  %3349 = vmatmul.mubr.bf16.gmra.mrb[40].mxu1 %v968_v36  ;;  %3381 = vmatmul.mubr.bf16.gmra.mrb[24].mxu0 %v968_v36  ;;  %v3698_v47 = vadd.f32 %v4355_v54, %v3322_v43 }
 0x228   :  { %v3323_v46 = vpop.f32.mrb[14].mxu0  ;;  %3429 = vmatpush3.bf16.msra.mxu0 %v3969_v30  ;;  %v3701_v51 = vadd.f32 %v4355_v54, %v916_v45 }
 0x229   :  { %v3704_v48 = vadd.f32 %v4355_v54, %v3323_v46  ;;  %v919_v49 = vpop.f32.mrb[15].mxu0  ;;  %3430 = vmatprep.subr.bf16.mxu0 %v3970_v40 }
 0x22a   :  { %v3707_v52 = vadd.f32 %v4355_v54, %v919_v49  ;;  %v3973_v54 = vld [vmem:[%s4698_s3 + $0x180] sm:$0xff]  }
 0x22b   :  { %v970_v53 = vpack.c.bf16 %v3704_v48, %v3698_v47 }
 0x22c   :  { %v969_v55 = vpack.c.bf16 %v3707_v52, %v3701_v51  ;;  %3431 = vmatpush3.bf16.msra.mxu0 %v3970_v40 }
 0x22d   :  { %3432 = vmatprep.subr.bf16.mxu0 %v3971_v50 }
 0x22e   :  { %3352 = vmatprep.mubr.bf16.mxu1 %v969_v55  ;;  %3384 = vmatprep.mubr.bf16.mxu0 %v969_v55 }
 0x22f   :  { %3353 = vmatmul.mubr.bf16.gmra.mrb[44].mxu1 %v970_v53  ;;  %3385 = vmatmul.mubr.bf16.gmra.mrb[28].mxu0 %v970_v53 }
 0x230   :  { %3433 = vmatpush3.bf16.msra.mxu0 %v3971_v50  ;;  %3436 = vmatprep.mubr.bf16.mxu0 %v4361_v3 }
 0x231   :  { %3434 = vmatprep.subr.bf16.mxu0 %v3972_v56  ;;  %3404 = vmatprep.mubr.bf16.mxu1 %v4202_v32  ;;  %v3977_v32 = vld [vmem:[%s4698_s3 + $0x190] sm:$0xff]  }
 0x234   :  { %3435 = vmatpush3.bf16.msra.mxu0 %v3972_v56 }
 0x235   :  { %3484 = vmatprep.subr.bf16.mxu0 %v3973_v54 }
 0x237   :  { %3437 = vmatmul.mubr.bf16.vlgmr.msra.gmra.mrb[32].mxu0 %v4359_v1 }
 0x238   :  { %3440 = vmatprep.mubr.bf16.mxu0 %v965_v19  ;;  %3485 = vmatpush3.bf16.msra.mxu0 %v3973_v54 }
 0x239   :  { %3486 = vmatprep.subr.bf16.mxu0 %v3975_v57 }
 0x23c   :  { %3487 = vmatpush3.bf16.msra.mxu0 %v3975_v57 }
 0x23d   :  { %3488 = vmatprep.subr.bf16.mxu0 %v3977_v32 }
 0x23f   :  { %3441 = vmatmul.mubr.bf16.gmra.mrb[36].mxu0 %v966_v17 }
 0x240   :  { %3444 = vmatprep.mubr.bf16.mxu0 %v967_v39  ;;  %3489 = vmatpush3.bf16.msra.mxu0 %v3977_v32 }
 0x241   :  { %3490 = vmatprep.subr.bf16.mxu0 %v3979_v58 }
 0x244   :  { %3491 = vmatpush3.bf16.msra.mxu0 %v3979_v58 }
 0x245   :  { %3492 = vmatprep.subr.bf16.mxu0 %v3981_v59 }
 0x247   :  { %3445 = vmatmul.mubr.bf16.gmra.mrb[40].mxu0 %v968_v36 }
 0x248   :  { %3448 = vmatprep.mubr.bf16.mxu0 %v969_v55  ;;  %3493 = vmatpush3.bf16.msra.mxu0 %v3981_v59 }
 0x249   :  { %3494 = vmatprep.subr.bf16.mxu0 %v3983_v60 }
 0x24c   :  { %3495 = vmatpush3.bf16.msra.mxu0 %v3983_v60  ;;  %v3974_v60 = vld [vmem:[%s4698_s3 + $0x1c0] sm:$0xff]  }
 0x24f   :  { %3449 = vmatmul.mubr.bf16.gmra.mrb[44].mxu0 %v970_v53 }
 0x2ea   :  { %v3374_v61 = vpop.f32.mrb[16].mxu0 }
 0x2eb   :  { %v1240_v62 = vpop.f32.mrb[17].mxu0 }
 0x2ec   :  { %v3375_v63 = vpop.f32.mrb[18].mxu0 }
 0x2ed   :  { %v1304_v0 = vpack.c.bf16 %v3375_v63, %v3374_v61  ;;  %v1243_v1 = vpop.f32.mrb[19].mxu0  ;;  %v3976_v61 = vld [vmem:[%s4698_s3 + $0x1c8] sm:$0xff]   ;;  %v3980_v63 = vld [vmem:[%s4698_s3 + $0x1d8] sm:$0xff]  }
 0x2ee   :  { %v1303_v3 = vpack.c.bf16 %v1243_v1, %v1240_v62  ;;  %v3978_v62 = vld [vmem:[%s4698_s3 + $0x1d0] sm:$0xff]   ;;  %v3984_v1 = vld [vmem:[%s4698_s3 + $0x1e8] sm:$0xff]  }
 0x2f0   :  { %3388 = vmatprep.subr.bf16.mxu1 %v1303_v3 }
 0x2f1   :  { %3389 = vmatpush3.bf16.msra.mxu1 %v1303_v3  ;;  %v3985_v3 = vld [vmem:[%s4698_s3 + $0x1b0] sm:$0xff]  }
 0x2f2   :  { %v3378_v4 = vpop.f32.mrb[20].mxu0  ;;  %3390 = vmatprep.subr.bf16.mxu1 %v1304_v0  ;;  %3496 = vmatprep.subr.bf16.mxu0 %v3985_v3 }
 0x2f3   :  { %v1256_v6 = vpop.f32.mrb[21].mxu0  ;;  %3497 = vmatpush3.bf16.msra.mxu0 %v3985_v3 }
 0x2f4   :  { %v3379_v7 = vpop.f32.mrb[22].mxu0 }
 0x2f5   :  { %v1306_v8 = vpack.c.bf16 %v3379_v7, %v3378_v4  ;;  %v1259_v9 = vpop.f32.mrb[23].mxu0  ;;  %3391 = vmatpush3.bf16.msra.mxu1 %v1304_v0  ;;  %v3982_v0 = vld [vmem:[%s4698_s3 + $0x1e0] sm:$0xff]   ;;  %v3986_v4 = vld [vmem:[%s4698_s3 + $0x1f0] sm:$0xff]   ;;  %v3988_v7 = vld [vmem:[%s4698_s3 + $0x1f8] sm:$0xff]  }
 0x2f6   :  { %v1305_v11 = vpack.c.bf16 %v1259_v9, %v1256_v6  ;;  %v3987_v6 = vld [vmem:[%s4698_s3 + $0x1b8] sm:$0xff]   ;;  %v2785_v9 = vld [vmem:[%s4702_s4 + $0x3] ss:$0 sm:$0xff] }
 0x2f7   :  { %3498 = vmatprep.subr.bf16.mxu0 %v3987_v6 }
 0x2f8   :  { %3392 = vmatprep.subr.bf16.mxu1 %v1305_v11  ;;  %3499 = vmatpush3.bf16.msra.mxu0 %v3987_v6 }
 0x2f9   :  { %3393 = vmatpush3.bf16.msra.mxu1 %v1305_v11  ;;  %v2819_v11 = vld [vmem:[%s4702_s4 + $0x4] ss:$0 sm:$0xff] }
 0x2fa   :  { %v3382_v12 = vpop.f32.mrb[24].mxu0  ;;  %3394 = vmatprep.subr.bf16.mxu1 %v1306_v8 }
 0x2fb   :  { %v1272_v14 = vpop.f32.mrb[25].mxu0 }
 0x2fc   :  { %v3383_v15 = vpop.f32.mrb[26].mxu0 }
 0x2fd   :  { %v1308_v16 = vpack.c.bf16 %v3383_v15, %v3382_v12  ;;  %v1275_v17 = vpop.f32.mrb[27].mxu0  ;;  %3395 = vmatpush3.bf16.msra.mxu1 %v1306_v8  ;;  %v3989_v8 = vld [vmem:[%s4698_s3 + $0x200] sm:$0xff]   ;;  %v3711_v12 = vadd.f32 %v2819_v11, %v2785_v9 }
 0x2fe   :  { %v1307_v19 = vpack.c.bf16 %v1275_v17, %v1272_v14  ;;  %v2845_v14 = vld [vmem:[%s4702_s4 + $0x5] ss:$0 sm:$0xff] }
 0x2ff   :  { %v4478_v15 = vadd.f32 %v3711_v12, %v2845_v14 }
 0x300   :  { %3396 = vmatprep.subr.bf16.mxu1 %v1307_v19 }
 0x301   :  { %3397 = vmatpush3.bf16.msra.mxu1 %v1307_v19 }
 0x302   :  { %v3386_v20 = vpop.f32.mrb[28].mxu0  ;;  %3398 = vmatprep.subr.bf16.mxu1 %v1308_v16 }
 0x303   :  { %v1288_v22 = vpop.f32.mrb[29].mxu0 }
 0x304   :  { %v3387_v23 = vpop.f32.mrb[30].mxu0 }
 0x305   :  { %v1310_v24 = vpack.c.bf16 %v3387_v23, %v3386_v20  ;;  %v1291_v25 = vpop.f32.mrb[31].mxu0  ;;  %3399 = vmatpush3.bf16.msra.mxu1 %v1308_v16 }
 0x306   :  { %v1309_v27 = vpack.c.bf16 %v1291_v25, %v1288_v22 }
 0x308   :  { %3400 = vmatprep.subr.bf16.mxu1 %v1309_v27 }
 0x309   :  { %3401 = vmatpush3.bf16.msra.mxu1 %v1309_v27 }
 0x30a   :  { %3402 = vmatprep.subr.bf16.mxu1 %v1310_v24  ;;  %v3438_v28 = vpop.f32.mrb[32].mxu0 }
 0x30b   :  { %v1515_v30 = vpop.f32.mrb[33].mxu0 }
 0x30c   :  { %v3439_v31 = vpop.f32.mrb[34].mxu0 }
 0x30d   :  { %v1579_v35 = vpack.c.bf16 %v3439_v31, %v3438_v28  ;;  %3403 = vmatpush3.bf16.msra.mxu1 %v1310_v24  ;;  %v1518_v36 = vpop.f32.mrb[35].mxu0 }
 0x30e   :  { %v1578_v39 = vpack.c.bf16 %v1518_v36, %v1515_v30 }
 0x310   :  { %3405 = vmatmul.mubr.bf16.vlgmr.msra.gmra.mrb[32].mxu1 %v4226_v2  ;;  %3452 = vmatprep.subr.bf16.mxu1 %v1578_v39 }
 0x311   :  { %3453 = vmatpush3.bf16.msra.mxu1 %v1578_v39  ;;  %3408 = vmatprep.mubr.bf16.mxu1 %v4231_v5 }
 0x312   :  { %v3442_v40 = vpop.f32.mrb[36].mxu0  ;;  %3454 = vmatprep.subr.bf16.mxu1 %v1579_v35 }
 0x313   :  { %v1531_v43 = vpop.f32.mrb[37].mxu0 }
 0x314   :  { %v3443_v45 = vpop.f32.mrb[38].mxu0 }
 0x315   :  { %v1581_v46 = vpack.c.bf16 %v3443_v45, %v3442_v40  ;;  %v1534_v47 = vpop.f32.mrb[39].mxu0  ;;  %3455 = vmatpush3.bf16.msra.mxu1 %v1579_v35  ;;  %v3990_v35 = vld [vmem:[%s4698_s3 + $0x208] sm:$0xff]  }
 0x316   :  { %v1580_v48 = vpack.c.bf16 %v1534_v47, %v1531_v43  ;;  %v3991_v47 = vld [vmem:[%s4698_s3 + $0x210] sm:$0xff]  }
 0x318   :  { %3409 = vmatmul.mubr.bf16.gmra.mrb[36].mxu1 %v4238_v10  ;;  %3456 = vmatprep.subr.bf16.mxu1 %v1580_v48 }
 0x319   :  { %3457 = vmatpush3.bf16.msra.mxu1 %v1580_v48  ;;  %3412 = vmatprep.mubr.bf16.mxu1 %v4243_v13 }
 0x31a   :  { %v3446_v49 = vpop.f32.mrb[40].mxu0  ;;  %3458 = vmatprep.subr.bf16.mxu1 %v1581_v46 }
 0x31b   :  { %v1547_v50 = vpop.f32.mrb[41].mxu0 }
 0x31c   :  { %v3447_v51 = vpop.f32.mrb[42].mxu0 }
 0x31d   :  { %v1583_v52 = vpack.c.bf16 %v3447_v51, %v3446_v49  ;;  %v1550_v53 = vpop.f32.mrb[43].mxu0  ;;  %3459 = vmatpush3.bf16.msra.mxu1 %v1581_v46 }
 0x31e   :  { %v1582_v55 = vpack.c.bf16 %v1550_v53, %v1547_v50 }
 0x320   :  { %3413 = vmatmul.mubr.bf16.gmra.mrb[40].mxu1 %v4250_v18  ;;  %3460 = vmatprep.subr.bf16.mxu1 %v1582_v55 }
 0x321   :  { %3461 = vmatpush3.bf16.msra.mxu1 %v1582_v55  ;;  %3416 = vmatprep.mubr.bf16.mxu1 %v4255_v21 }
 0x322   :  { %v3450_v56 = vpop.f32.mrb[44].mxu0  ;;  %3462 = vmatprep.subr.bf16.mxu1 %v1583_v52 }
 0x323   :  { %v1563_v54 = vpop.f32.mrb[45].mxu0 }
 0x324   :  { %v3451_v57 = vpop.f32.mrb[46].mxu0 }
 0x325   :  { %v1585_v32 = vpack.c.bf16 %v3451_v57, %v3450_v56  ;;  %v1566_v58 = vpop.f32.mrb[47].mxu0  ;;  %3463 = vmatpush3.bf16.msra.mxu1 %v1583_v52  ;;  %v3992_v52 = vld [vmem:[%s4698_s3 + $0x218] sm:$0xff]  }
 0x326   :  { %v1584_v59 = vpack.c.bf16 %v1566_v58, %v1563_v54  ;;  %v3993_v58 = vld [vmem:[%s4698_s3 + $0x220] sm:$0xff]  }
 0x328   :  { %3417 = vmatmul.mubr.bf16.gmra.mrb[44].mxu1 %v4262_v26  ;;  %3464 = vmatprep.subr.bf16.mxu1 %v1584_v59 }
 0x329   :  { %3465 = vmatpush3.bf16.msra.mxu1 %v1584_v59  ;;  %3468 = vmatprep.mubr.bf16.mxu1 %v4267_v29 }
 0x32a   :  { %3466 = vmatprep.subr.bf16.mxu1 %v1585_v32 }
 0x32d   :  { %3467 = vmatpush3.bf16.msra.mxu1 %v1585_v32 }
 0x32e   :  { %3516 = vmatprep.subr.bf16.mxu1 %v3974_v60 }
 0x330   :  { %3469 = vmatmul.mubr.bf16.vlgmr.msra.gmra.mrb[32].mxu1 %v4277_v33 }
 0x331   :  { %3472 = vmatprep.mubr.bf16.mxu1 %v4282_v34  ;;  %3517 = vmatpush3.bf16.msra.mxu1 %v3974_v60 }
 0x332   :  { %3518 = vmatprep.subr.bf16.mxu1 %v3976_v61 }
 0x335   :  { %3519 = vmatpush3.bf16.msra.mxu1 %v3976_v61 }
 0x336   :  { %3520 = vmatprep.subr.bf16.mxu1 %v3978_v62 }
 0x338   :  { %3473 = vmatmul.mubr.bf16.gmra.mrb[36].mxu1 %v4295_v37 }
 0x339   :  { %3476 = vmatprep.mubr.bf16.mxu1 %v4300_v38  ;;  %3521 = vmatpush3.bf16.msra.mxu1 %v3978_v62 }
 0x33a   :  { %3522 = vmatprep.subr.bf16.mxu1 %v3980_v63 }
 0x33d   :  { %3523 = vmatpush3.bf16.msra.mxu1 %v3980_v63  ;;  %v3994_v63 = vld [vmem:[%s4698_s3 + $0x228] sm:$0xff]  }
 0x33e   :  { %3524 = vmatprep.subr.bf16.mxu1 %v3982_v0 }
 0x340   :  { %3477 = vmatmul.mubr.bf16.gmra.mrb[40].mxu1 %v4313_v41 }
 0x341   :  { %3480 = vmatprep.mubr.bf16.mxu1 %v4318_v42  ;;  %3525 = vmatpush3.bf16.msra.mxu1 %v3982_v0 }
 0x342   :  { %3526 = vmatprep.subr.bf16.mxu1 %v3984_v1 }
 0x345   :  { %3527 = vmatpush3.bf16.msra.mxu1 %v3984_v1 }
 0x346   :  { %3528 = vmatprep.subr.bf16.mxu1 %v3986_v4 }
 0x348   :  { %3481 = vmatmul.mubr.bf16.gmra.mrb[44].mxu1 %v4328_v44 }
 0x349   :  { %3529 = vmatpush3.bf16.msra.mxu1 %v3986_v4 }
 0x34a   :  { %3530 = vmatprep.subr.bf16.mxu1 %v3988_v7 }
 0x34d   :  { %3531 = vmatpush3.bf16.msra.mxu1 %v3988_v7 }
 0x34e   :  { %3580 = vmatprep.subr.bf16.mxu1 %v3989_v8 }
 0x403   :  { %v3470_v16 = vpop.f32.mrb[32].mxu1 }
 0x404   :  { %v3709_v17 = vadd.f32 %v3711_v12, %v3470_v16  ;;  %v1628_v19 = vpop.f32.mrb[33].mxu1  ;;  %v3996_v16 = vld [vmem:[%s4698_s3 + $0x238] sm:$0xff]  }
 0x405   :  { %v3712_v20 = vadd.f32 %v3711_v12, %v1628_v19  ;;  %v3471_v22 = vpop.f32.mrb[34].mxu1 }
 0x406   :  { %v3710_v23 = vadd.f32 %v3709_v17, %v2845_v14  ;;  %v3716_v24 = vadd.f32 %v4478_v15, %v3471_v22  ;;  %v1631_v25 = vpop.f32.mrb[35].mxu1 }
 0x407   :  { %v3713_v27 = vadd.f32 %v3712_v20, %v2845_v14  ;;  %v3719_v28 = vadd.f32 %v4478_v15, %v1631_v25 }
 0x408   :  { %v4482_v30 = vpack.c.bf16 %v3716_v24, %v3710_v23 }
 0x409   :  { %v4484_v31 = vpack.c.bf16 %v3719_v28, %v3713_v27 }
 0x40b   :  { %v3474_v36 = vpop.f32.mrb[36].mxu1  ;;  %3500 = vmatprep.mubr.bf16.mxu0 %v4484_v31  ;;  %3532 = vmatprep.mubr.bf16.mxu1 %v4484_v31 }
 0x40c   :  { %v1644_v39 = vpop.f32.mrb[37].mxu1  ;;  %3501 = vmatmul.mubr.bf16.vlgmr.msra.gmra.mrb[48].mxu0 %v4482_v30  ;;  %3533 = vmatmul.mubr.bf16.vlgmr.msra.gmra.mrb[48].mxu1 %v4482_v30  ;;  %v3722_v43 = vadd.f32 %v4478_v15, %v3474_v36 }
 0x40d   :  { %v3475_v40 = vpop.f32.mrb[38].mxu1  ;;  %3581 = vmatpush3.bf16.msra.mxu1 %v3989_v8  ;;  %v3725_v48 = vadd.f32 %v4478_v15, %v1644_v39  ;;  %v3995_v8 = vld [vmem:[%s4698_s3 + $0x230] sm:$0xff]  }
 0x40e   :  { %v3728_v45 = vadd.f32 %v4478_v15, %v3475_v40  ;;  %v1647_v46 = vpop.f32.mrb[39].mxu1  ;;  %3582 = vmatprep.subr.bf16.mxu1 %v3990_v35 }
 0x40f   :  { %v3731_v49 = vadd.f32 %v4478_v15, %v1647_v46 }
 0x410   :  { %v1726_v50 = vpack.c.bf16 %v3728_v45, %v3722_v43 }
 0x411   :  { %v1725_v51 = vpack.c.bf16 %v3731_v49, %v3725_v48  ;;  %3583 = vmatpush3.bf16.msra.mxu1 %v3990_v35 }
 0x412   :  { %3584 = vmatprep.subr.bf16.mxu1 %v3991_v47 }
 0x413   :  { %v3478_v53 = vpop.f32.mrb[40].mxu1  ;;  %3504 = vmatprep.mubr.bf16.mxu0 %v1725_v51  ;;  %3536 = vmatprep.mubr.bf16.mxu1 %v1725_v51 }
 0x414   :  { %v1660_v55 = vpop.f32.mrb[41].mxu1  ;;  %3505 = vmatmul.mubr.bf16.gmra.mrb[52].mxu0 %v1726_v50  ;;  %3537 = vmatmul.mubr.bf16.gmra.mrb[52].mxu1 %v1726_v50  ;;  %v3734_v54 = vadd.f32 %v4478_v15, %v3478_v53 }
 0x415   :  { %v3479_v56 = vpop.f32.mrb[42].mxu1  ;;  %3585 = vmatpush3.bf16.msra.mxu1 %v3991_v47  ;;  %v3737_v59 = vadd.f32 %v4478_v15, %v1660_v55 }
 0x416   :  { %v3740_v57 = vadd.f32 %v4478_v15, %v3479_v56  ;;  %v1663_v32 = vpop.f32.mrb[43].mxu1  ;;  %3586 = vmatprep.subr.bf16.mxu1 %v3992_v52 }
 0x417   :  { %v3743_v60 = vadd.f32 %v4478_v15, %v1663_v32 }
 0x418   :  { %v1728_v61 = vpack.c.bf16 %v3740_v57, %v3734_v54 }
 0x419   :  { %v1727_v62 = vpack.c.bf16 %v3743_v60, %v3737_v59  ;;  %3587 = vmatpush3.bf16.msra.mxu1 %v3992_v52 }
 0x41a   :  { %3588 = vmatprep.subr.bf16.mxu1 %v3993_v58 }
 0x41b   :  { %v3482_v0 = vpop.f32.mrb[44].mxu1  ;;  %3508 = vmatprep.mubr.bf16.mxu0 %v1727_v62  ;;  %3540 = vmatprep.mubr.bf16.mxu1 %v1727_v62 }
 0x41c   :  { %v1676_v1 = vpop.f32.mrb[45].mxu1  ;;  %3509 = vmatmul.mubr.bf16.gmra.mrb[56].mxu0 %v1728_v61  ;;  %3541 = vmatmul.mubr.bf16.gmra.mrb[56].mxu1 %v1728_v61  ;;  %v3746_v4 = vadd.f32 %v4478_v15, %v3482_v0 }
 0x41d   :  { %v3483_v3 = vpop.f32.mrb[46].mxu1  ;;  %3589 = vmatpush3.bf16.msra.mxu1 %v3993_v58  ;;  %v3749_v9 = vadd.f32 %v4478_v15, %v1676_v1 }
 0x41e   :  { %v3752_v6 = vadd.f32 %v4478_v15, %v3483_v3  ;;  %v1679_v7 = vpop.f32.mrb[47].mxu1  ;;  %3590 = vmatprep.subr.bf16.mxu1 %v3994_v63 }
 0x41f   :  { %v3755_v11 = vadd.f32 %v4478_v15, %v1679_v7  ;;  %v4061_v15 = vld [vmem:[%s4700_s1] sm:$0xff]  }
 0x420   :  { %v1730_v12 = vpack.c.bf16 %v3752_v6, %v3746_v4 }
 0x421   :  { %v1729_v14 = vpack.c.bf16 %v3755_v11, %v3749_v9  ;;  %3591 = vmatpush3.bf16.msra.mxu1 %v3994_v63 }
 0x422   :  { %3592 = vmatprep.subr.bf16.mxu1 %v3995_v8 }
 0x423   :  { %3512 = vmatprep.mubr.bf16.mxu0 %v1729_v14  ;;  %3544 = vmatprep.mubr.bf16.mxu1 %v1729_v14 }
 0x424   :  { %3513 = vmatmul.mubr.bf16.gmra.mrb[60].mxu0 %v1730_v12  ;;  %3545 = vmatmul.mubr.bf16.gmra.mrb[60].mxu1 %v1730_v12 }
 0x425   :  { %3593 = vmatpush3.bf16.msra.mxu1 %v3995_v8  ;;  %3596 = vmatprep.mubr.bf16.mxu1 %v4484_v31 }
 0x426   :  { %3594 = vmatprep.subr.bf16.mxu1 %v3996_v16  ;;  %3564 = vmatprep.mubr.bf16.mxu0 %v4061_v15  ;;  %v2923_v15 = vld [vmem:[%s4702_s4 + $0x8] ss:$0 sm:$0xff] }
 0x429   :  { %3595 = vmatpush3.bf16.msra.mxu1 %v3996_v16 }
 0x42c   :  { %3597 = vmatmul.mubr.bf16.vlgmr.msra.gmra.mrb[64].mxu1 %v4482_v30 }
 0x42d   :  { %3600 = vmatprep.mubr.bf16.mxu1 %v1725_v51 }
 0x434   :  { %3601 = vmatmul.mubr.bf16.gmra.mrb[68].mxu1 %v1726_v50 }
 0x435   :  { %3604 = vmatprep.mubr.bf16.mxu1 %v1727_v62 }
 0x43c   :  { %3605 = vmatmul.mubr.bf16.gmra.mrb[72].mxu1 %v1728_v61 }
 0x43d   :  { %3608 = vmatprep.mubr.bf16.mxu1 %v1729_v14 }
 0x444   :  { %3609 = vmatmul.mubr.bf16.gmra.mrb[76].mxu1 %v1730_v12 }
 0x445   :  { %3636 = vmatprep.mubr.bf16.mxu1 %v4300_v38 }
 0x4df   :  { %v3534_v17 = vpop.f32.mrb[48].mxu1 }
 0x4e0   :  { %v2000_v19 = vpop.f32.mrb[49].mxu1 }
 0x4e1   :  { %v3535_v20 = vpop.f32.mrb[50].mxu1 }
 0x4e2   :  { %v2064_v22 = vpack.c.bf16 %v3535_v20, %v3534_v17  ;;  %v2003_v23 = vpop.f32.mrb[51].mxu1 }
 0x4e3   :  { %v2063_v24 = vpack.c.bf16 %v2003_v23, %v2000_v19 }
 0x4e5   :  { %3548 = vmatprep.subr.bf16.mxu0 %v2063_v24 }
 0x4e6   :  { %3549 = vmatpush3.bf16.msra.mxu0 %v2063_v24 }
 0x4e7   :  { %v3538_v25 = vpop.f32.mrb[52].mxu1  ;;  %3550 = vmatprep.subr.bf16.mxu0 %v2064_v22 }
 0x4e8   :  { %v2016_v27 = vpop.f32.mrb[53].mxu1 }
 0x4e9   :  { %v3539_v28 = vpop.f32.mrb[54].mxu1 }
 0x4ea   :  { %v2066_v30 = vpack.c.bf16 %v3539_v28, %v3538_v25  ;;  %v2019_v31 = vpop.f32.mrb[55].mxu1  ;;  %3551 = vmatpush3.bf16.msra.mxu0 %v2064_v22 }
 0x4eb   :  { %v2065_v35 = vpack.c.bf16 %v2019_v31, %v2016_v27 }
 0x4ed   :  { %3552 = vmatprep.subr.bf16.mxu0 %v2065_v35 }
 0x4ee   :  { %3553 = vmatpush3.bf16.msra.mxu0 %v2065_v35 }
 0x4ef   :  { %v3542_v36 = vpop.f32.mrb[56].mxu1  ;;  %3554 = vmatprep.subr.bf16.mxu0 %v2066_v30 }
 0x4f0   :  { %v2032_v38 = vpop.f32.mrb[57].mxu1 }
 0x4f1   :  { %v3543_v39 = vpop.f32.mrb[58].mxu1 }
 0x4f2   :  { %v2068_v40 = vpack.c.bf16 %v3543_v39, %v3542_v36  ;;  %v2035_v43 = vpop.f32.mrb[59].mxu1  ;;  %3555 = vmatpush3.bf16.msra.mxu0 %v2066_v30  ;;  %v4062_v30 = vmov -1e+30  }
 0x4f3   :  { %v2067_v45 = vpack.c.bf16 %v2035_v43, %v2032_v38 }
 0x4f5   :  { %3556 = vmatprep.subr.bf16.mxu0 %v2067_v45 }
 0x4f6   :  { %3557 = vmatpush3.bf16.msra.mxu0 %v2067_v45 }
 0x4f7   :  { %v3546_v46 = vpop.f32.mrb[60].mxu1  ;;  %3558 = vmatprep.subr.bf16.mxu0 %v2068_v40 }
 0x4f8   :  { %v2048_v47 = vpop.f32.mrb[61].mxu1 }
 0x4f9   :  { %v3547_v48 = vpop.f32.mrb[62].mxu1 }
 0x4fa   :  { %v2070_v49 = vpack.c.bf16 %v3547_v48, %v3546_v46  ;;  %v2051_v50 = vpop.f32.mrb[63].mxu1  ;;  %3559 = vmatpush3.bf16.msra.mxu0 %v2068_v40 }
 0x4fb   :  { %v2069_v51 = vpack.c.bf16 %v2051_v50, %v2048_v47 }
 0x4fd   :  { %3560 = vmatprep.subr.bf16.mxu0 %v2069_v51 }
 0x4fe   :  { %3561 = vmatpush3.bf16.msra.mxu0 %v2069_v51 }
 0x4ff   :  { %3562 = vmatprep.subr.bf16.mxu0 %v2070_v49  ;;  %v3598_v52 = vpop.f32.mrb[64].mxu1 }
 0x500   :  { %v2275_v53 = vpop.f32.mrb[65].mxu1 }
 0x501   :  { %v3599_v55 = vpop.f32.mrb[66].mxu1 }
 0x502   :  { %v2339_v56 = vpack.c.bf16 %v3599_v55, %v3598_v52  ;;  %3563 = vmatpush3.bf16.msra.mxu0 %v2070_v49  ;;  %v2278_v54 = vpop.f32.mrb[67].mxu1 }
 0x503   :  { %v2338_v57 = vpack.c.bf16 %v2278_v54, %v2275_v53 }
 0x505   :  { %3565 = vmatmul.mubr.bf16.vlgmr.msra.gmra.mrb[48].mxu0 %v4226_v2  ;;  %3612 = vmatprep.subr.bf16.mxu0 %v2338_v57 }
 0x506   :  { %3644 = vmatprep.subr.bf16.mxu1 %v2338_v57  ;;  %3613 = vmatpush3.bf16.msra.mxu0 %v2338_v57 }
 0x507   :  { %3652 = vmatpush3.bf16.msra.mxu1 %v2338_v57  ;;  %v3602_v32 = vpop.f32.mrb[68].mxu1  ;;  %3614 = vmatprep.subr.bf16.mxu0 %v2339_v56 }
 0x508   :  { %3645 = vmatprep.subr.bf16.mxu1 %v2339_v56  ;;  %v2291_v58 = vpop.f32.mrb[69].mxu1  ;;  %3568 = vmatprep.mubr.bf16.mxu0 %v4231_v5 }
 0x509   :  { %v3603_v59 = vpop.f32.mrb[70].mxu1 }
 0x50a   :  { %v2341_v60 = vpack.c.bf16 %v3603_v59, %v3602_v32  ;;  %v2294_v61 = vpop.f32.mrb[71].mxu1  ;;  %3615 = vmatpush3.bf16.msra.mxu0 %v2339_v56 }
 0x50b   :  { %v2340_v62 = vpack.c.bf16 %v2294_v61, %v2291_v58  ;;  %3653 = vmatpush3.bf16.msra.mxu1 %v2339_v56 }
 0x50d   :  { %3569 = vmatmul.mubr.bf16.gmra.mrb[52].mxu0 %v4238_v10  ;;  %3616 = vmatprep.subr.bf16.mxu0 %v2340_v62 }
 0x50e   :  { %3646 = vmatprep.subr.bf16.mxu1 %v2340_v62  ;;  %3617 = vmatpush3.bf16.msra.mxu0 %v2340_v62 }
 0x50f   :  { %3654 = vmatpush3.bf16.msra.mxu1 %v2340_v62  ;;  %v3606_v2 = vpop.f32.mrb[72].mxu1  ;;  %3618 = vmatprep.subr.bf16.mxu0 %v2341_v60 }
 0x510   :  { %3647 = vmatprep.subr.bf16.mxu1 %v2341_v60  ;;  %v2307_v63 = vpop.f32.mrb[73].mxu1  ;;  %3572 = vmatprep.mubr.bf16.mxu0 %v4243_v13 }
 0x511   :  { %v3607_v0 = vpop.f32.mrb[74].mxu1 }
 0x512   :  { %v2343_v5 = vpack.c.bf16 %v3607_v0, %v3606_v2  ;;  %v2310_v1 = vpop.f32.mrb[75].mxu1  ;;  %3619 = vmatpush3.bf16.msra.mxu0 %v2341_v60 }
 0x513   :  { %v2342_v3 = vpack.c.bf16 %v2310_v1, %v2307_v63  ;;  %3655 = vmatpush3.bf16.msra.mxu1 %v2341_v60 }
 0x515   :  { %3573 = vmatmul.mubr.bf16.gmra.mrb[56].mxu0 %v4250_v18  ;;  %3620 = vmatprep.subr.bf16.mxu0 %v2342_v3 }
 0x516   :  { %3648 = vmatprep.subr.bf16.mxu1 %v2342_v3  ;;  %3621 = vmatpush3.bf16.msra.mxu0 %v2342_v3 }
 0x517   :  { %3656 = vmatpush3.bf16.msra.mxu1 %v2342_v3  ;;  %v3610_v10 = vpop.f32.mrb[76].mxu1  ;;  %3622 = vmatprep.subr.bf16.mxu0 %v2343_v5 }
 0x518   :  { %3649 = vmatprep.subr.bf16.mxu1 %v2343_v5  ;;  %v2323_v4 = vpop.f32.mrb[77].mxu1  ;;  %3576 = vmatprep.mubr.bf16.mxu0 %v4255_v21 }
 0x519   :  { %v3611_v6 = vpop.f32.mrb[78].mxu1 }
 0x51a   :  { %v2345_v13 = vpack.c.bf16 %v3611_v6, %v3610_v10  ;;  %v2326_v7 = vpop.f32.mrb[79].mxu1  ;;  %3623 = vmatpush3.bf16.msra.mxu0 %v2343_v5 }
 0x51b   :  { %v2344_v8 = vpack.c.bf16 %v2326_v7, %v2323_v4  ;;  %3657 = vmatpush3.bf16.msra.mxu1 %v2343_v5 }
 0x51d   :  { %3577 = vmatmul.mubr.bf16.gmra.mrb[60].mxu0 %v4262_v26  ;;  %3624 = vmatprep.subr.bf16.mxu0 %v2344_v8 }
 0x51e   :  { %3650 = vmatprep.subr.bf16.mxu1 %v2344_v8  ;;  %3625 = vmatpush3.bf16.msra.mxu0 %v2344_v8 }
 0x51f   :  { %3658 = vmatpush3.bf16.msra.mxu1 %v2344_v8  ;;  %3626 = vmatprep.subr.bf16.mxu0 %v2345_v13 }
 0x520   :  { %3651 = vmatprep.subr.bf16.mxu1 %v2345_v13  ;;  %3628 = vmatprep.mubr.bf16.mxu0 %v4267_v29  ;;  %v2863_v29 = vld [vmem:[%s4702_s4 + $0x6] ss:$0 sm:$0xff] }
 0x522   :  { %3627 = vmatpush3.bf16.msra.mxu0 %v2345_v13 }
 0x523   :  { %3659 = vmatpush3.bf16.msra.mxu1 %v2345_v13 }
 0x525   :  { %3629 = vmatmul.mubr.bf16.vlgmr.msra.gmra.mrb[48].mxu0 %v4277_v33  ;;  %v2897_v33 = vld [vmem:[%s4702_s4 + $0x7] ss:$0 sm:$0xff] }
 0x526   :  { %3637 = vmatmul.mubr.bf16.vlgmr.msra.gmra.mrb[80].mxu1 %v4313_v41  ;;  %3632 = vmatprep.mubr.bf16.mxu0 %v4282_v34  ;;  %v2483_v41 = vlaneseq  ;;  %v3759_v34 = vadd.f32 %v2897_v33, %v2863_v29 }
 0x527   :  { %3640 = vmatprep.mubr.bf16.mxu1 %v4318_v42 }
 0x528   :  { %v3766_v28 = vadd.f32 %v3759_v34, %v2923_v15 }
 0x52d   :  { %3633 = vmatmul.mubr.bf16.gmra.mrb[52].mxu0 %v4295_v37  ;;  %v2484_v37 = vand.u32 127, %v2483_v41 }
 0x52e   :  { %3641 = vmatmul.mubr.bf16.gmra.mrb[84].mxu1 %v4328_v44 }
 0x52f   :  { %vm2485_vm0 = vcmp.lt.s32.totalorder %v2484_v37, 8 }
 0x530   :  { %v4552_v31 = vsel %vm2485_vm0, 0.0, %v4062_v30 }
 0x5e8   :  { %v3574_v18 = vpop.f32.mrb[56].mxu0 }
 0x5e9   :  { %v2145_v21 = vpop.f32.mrb[57].mxu0  ;;  %v3781_v44 = vadd.f32 %v3759_v34, %v3574_v18 }
 0x5ea   :  { %v3575_v26 = vpop.f32.mrb[58].mxu0  ;;  %v3785_v16 = vadd.f32 %v3759_v34, %v2145_v21 }
 0x5eb   :  { %v2148_v9 = vpop.f32.mrb[59].mxu0  ;;  %v3789_v17 = vadd.f32 %v3759_v34, %v3575_v26  ;;  %v3782_v22 = vadd.f32 %v3781_v44, %v2923_v15 }
 0x5ec   :  { %v3793_v19 = vadd.f32 %v3759_v34, %v2148_v9  ;;  %v3786_v27 = vadd.f32 %v3785_v16, %v2923_v15 }
 0x5ed   :  { %v3790_v39 = vadd.f32 %v3789_v17, %v2923_v15 }
 0x5ee   :  { %v3794_v47 = vadd.f32 %v3793_v19, %v2923_v15 }
 0x5f0   :  { %v3578_v11 = vpop.f32.mrb[60].mxu0 }
 0x5f1   :  { %v2161_v42 = vpop.f32.mrb[61].mxu0  ;;  %v3797_v48 = vadd.f32 %v3759_v34, %v3578_v11 }
 0x5f2   :  { %v3579_v12 = vpop.f32.mrb[62].mxu0  ;;  %v3801_v53 = vadd.f32 %v3759_v34, %v2161_v42 }
 0x5f3   :  { %v2164_v14 = vpop.f32.mrb[63].mxu0  ;;  %v3805_v57 = vadd.f32 %v3759_v34, %v3579_v12  ;;  %v3798_v60 = vadd.f32 %v3797_v48, %v2923_v15 }
 0x5f4   :  { %v3809_v32 = vadd.f32 %v3759_v34, %v2164_v14  ;;  %v3802_v2 = vadd.f32 %v3801_v53, %v2923_v15 }
 0x5f5   :  { %v3806_v10 = vadd.f32 %v3805_v57, %v2923_v15 }
 0x5f6   :  { %v3810_v13 = vadd.f32 %v3809_v32, %v2923_v15 }
 0x5f8   :  { %v3630_v20 = vpop.f32.mrb[48].mxu0 }
 0x5f9   :  { %v3757_v23 = vadd.f32 %v3759_v34, %v3630_v20  ;;  %v3638_v24 = vpop.f32.mrb[80].mxu1  ;;  %v2388_v25 = vpop.f32.mrb[49].mxu0 }
 0x5fa   :  { %v3783_v35 = vadd.f32 %v3782_v22, %v3638_v24  ;;  %v2420_v36 = vpop.f32.mrb[81].mxu1  ;;  %v3631_v38 = vpop.f32.mrb[50].mxu0  ;;  %v3760_v49 = vadd.f32 %v3759_v34, %v2388_v25 }
 0x5fb   :  { %v3758_v40 = vadd.f32 %v3757_v23, %v2923_v15  ;;  %v3787_v43 = vadd.f32 %v3786_v27, %v2420_v36  ;;  %v3639_v45 = vpop.f32.mrb[82].mxu1  ;;  %v2391_v46 = vpop.f32.mrb[51].mxu0  ;;  %v3764_v55 = vadd.f32 %v3766_v28, %v3631_v38 }
 0x5fc   :  { %v3791_v50 = vadd.f32 %v3790_v39, %v3639_v45  ;;  %v2423_v51 = vpop.f32.mrb[83].mxu1  ;;  %v2497_v52 = vadd.f32 %v3783_v35, %v4552_v31  ;;  %v3761_v58 = vadd.f32 %v3760_v49, %v2923_v15  ;;  %v3767_v8 = vadd.f32 %v3766_v28, %v2391_v46 }
 0x5fd   :  { %v3795_v56 = vadd.f32 %v3794_v47, %v2423_v51  ;;  %v2489_v54 = vadd.f32 %v3758_v40, %v4552_v31  ;;  %v2495_v61 = vadd.f32 %v3787_v43, %v4552_v31  ;;  %v2490_v0 = vadd.f32 %v3764_v55, %v4552_v31 }
 0x5fe   :  { %2523 = vmax.xlane.f32.xlu0 %v2497_v52  ;;  %v2487_v26 = vadd.f32 %v3761_v58, %v4552_v31  ;;  %v2498_v29 = vadd.f32 %v3791_v50, %v4552_v31  ;;  %v2488_v41 = vadd.f32 %v3767_v8, %v4552_v31 }
 0x5ff   :  { %2507 = vmax.xlane.f32.xlu1 %v2489_v54  ;;  %v2496_v11 = vadd.f32 %v3795_v56, %v4552_v31 }
 0x600   :  { %v3634_v59 = vpop.f32.mrb[52].mxu0 }
 0x601   :  { %v3642_v62 = vpop.f32.mrb[84].mxu1  ;;  %v2404_v63 = vpop.f32.mrb[53].mxu0  ;;  %v3770_v33 = vadd.f32 %v3766_v28, %v3634_v59 }
 0x602   :  { %v3799_v5 = vadd.f32 %v3798_v60, %v3642_v62  ;;  %v2436_v1 = vpop.f32.mrb[85].mxu1  ;;  %2519 = vmax.xlane.f32.xlu0 %v2495_v61  ;;  %v3635_v3 = vpop.f32.mrb[54].mxu0  ;;  %v3773_v42 = vadd.f32 %v3766_v28, %v2404_v63 }
 0x603   :  { %v3803_v4 = vadd.f32 %v3802_v2, %v2436_v1  ;;  %v3643_v6 = vpop.f32.mrb[86].mxu1  ;;  %2509 = vmax.xlane.f32.xlu1 %v2490_v0  ;;  %v2407_v7 = vpop.f32.mrb[55].mxu0  ;;  %v3776_v34 = vadd.f32 %v3766_v28, %v3635_v3  ;;  %v2493_v12 = vadd.f32 %v3770_v33, %v4552_v31 }
 0x604   :  { %v3807_v18 = vadd.f32 %v3806_v10, %v3643_v6  ;;  %v2439_v21 = vpop.f32.mrb[87].mxu1  ;;  %v3779_v37 = vadd.f32 %v3766_v28, %v2407_v7  ;;  %v2491_v44 = vadd.f32 %v3773_v42, %v4552_v31  ;;  %v4575_v19 = vadd.f32 %v3799_v5, %v4552_v31 }
 0x605   :  { %v3811_v9 = vadd.f32 %v3810_v13, %v2439_v21  ;;  %v2494_v14 = vadd.f32 %v3776_v34, %v4552_v31  ;;  %v4567_v15 = vadd.f32 %v3803_v4, %v4552_v31 }
 0x606   :  { %2503 = vmax.xlane.f32.xlu0 %v2487_v26  ;;  %v2492_v16 = vadd.f32 %v3779_v37, %v4552_v31  ;;  %v4578_v20 = vadd.f32 %v3807_v18, %v4552_v31 }
 0x607   :  { %2525 = vmax.xlane.f32.xlu1 %v2498_v29  ;;  %v4570_v17 = vadd.f32 %v3811_v9, %v4552_v31 }
 0x60a   :  { %2505 = vmax.xlane.f32.xlu0 %v2488_v41 }
 0x60b   :  { %2521 = vmax.xlane.f32.xlu1 %v2496_v11 }
 0x60e   :  { %2515 = vmax.xlane.f32.xlu0 %v2493_v12 }
 0x60f   :  { %2517 = vmax.xlane.f32.xlu1 %v2494_v14 }
 0x612   :  { %2511 = vmax.xlane.f32.xlu0 %v2491_v44 }
 0x613   :  { %2513 = vmax.xlane.f32.xlu1 %v2492_v16 }
 0x616   :  { %2527 = vmax.xlane.f32.xlu0 %v4567_v15 }
 0x617   :  { %2529 = vmax.xlane.f32.xlu1 %v4570_v17 }
 0x61a   :  { %2531 = vmax.xlane.f32.xlu0 %v4575_v19 }
 0x61b   :  { %2533 = vmax.xlane.f32.xlu1 %v4578_v20 }
 0x68b   :  { %v2524_v22 = vpop.xlane.xlu0 %2523 }
 0x68c   :  { %v4582_v23 = vsub.f32 %v2497_v52, %v2524_v22  ;;  %v2508_v24 = vpop.xlane.xlu1 %2507 }
 0x68d   :  { %v4585_v28 = vsub.f32 %v2489_v54, %v2508_v24 }
 0x68e   :  { %v2571_v25 = vmul.f32 1.442695, %v4582_v23 }
 0x68f   :  { %v2520_v27 = vpop.xlane.xlu0 %2519  ;;  %v2555_v40 = vmul.f32 1.442695, %v4585_v28 }
 0x690   :  { %3997 = vpow2.f32 %v2571_v25  ;;  %v4587_v30 = vsub.f32 %v2495_v61, %v2520_v27  ;;  %v2510_v35 = vpop.xlane.xlu1 %2509 }
 0x691   :  { %v4589_v36 = vsub.f32 %v2490_v0, %v2510_v35 }
 0x692   :  { %v2567_v31 = vmul.f32 1.442695, %v4587_v30 }
 0x693   :  { %v2557_v38 = vmul.f32 1.442695, %v4589_v36  ;;  %v2504_v39 = vpop.xlane.xlu0 %2503 }
 0x694   :  { %3999 = vpow2.f32 %v2567_v31  ;;  %v4594_v43 = vsub.f32 %v2487_v26, %v2504_v39  ;;  %v2526_v45 = vpop.xlane.xlu1 %2525 }
 0x695   :  { %4001 = vpow2.f32 %v2557_v38  ;;  %v4596_v46 = vsub.f32 %v2498_v29, %v2526_v45 }
 0x696   :  { %4003 = vpow2.f32 %v2555_v40  ;;  %v2551_v49 = vmul.f32 1.442695, %v4594_v43 }
 0x697   :  { %v2573_v47 = vmul.f32 1.442695, %v4596_v46  ;;  %v2506_v48 = vpop.xlane.xlu0 %2505 }
 0x698   :  { %v4600_v50 = vsub.f32 %v2488_v41, %v2506_v48  ;;  %v2522_v51 = vpop.xlane.xlu1 %2521 }
 0x699   :  { %4005 = vpow2.f32 %v2573_v47  ;;  %v4602_v52 = vsub.f32 %v2496_v11, %v2522_v51 }
 0x69a   :  { %v3998_v53 = vpop.eup %3997  ;;  %v2553_v55 = vmul.f32 1.442695, %v4600_v50  ;;  %4007 = vpow2.f32 %v2551_v49 }
 0x69b   :  { %v2516_v56 = vpop.xlane.xlu0 %2515  ;;  %2603 = vadd.xlane.f32.xlu0 %v3998_v53  ;;  %v2569_v32 = vmul.f32 1.442695, %v4602_v52 }
 0x69c   :  { %v4605_v54 = vsub.f32 %v2493_v12, %v2516_v56  ;;  %v2518_v57 = vpop.xlane.xlu1 %2517  ;;  %4009 = vpow2.f32 %v2553_v55 }
 0x69d   :  { %v4608_v58 = vsub.f32 %v2494_v14, %v2518_v57 }
 0x69e   :  { %v4000_v59 = vpop.eup %3999  ;;  %v2563_v60 = vmul.f32 1.442695, %v4605_v54 }
 0x69f   :  { %v4002_v61 = vpop.eup %4001  ;;  %2599 = vadd.xlane.f32.xlu0 %v4000_v59  ;;  %v2512_v62 = vpop.xlane.xlu0 %2511  ;;  %v2565_v0 = vmul.f32 1.442695, %v4608_v58 }
 0x6a0   :  { %4011 = vpow2.f32 %v2563_v60  ;;  %v4611_v2 = vsub.f32 %v2491_v44, %v2512_v62  ;;  %2589 = vadd.xlane.f32.xlu1 %v4002_v61  ;;  %v2514_v63 = vpop.xlane.xlu1 %2513  ;;  %v4004_v1 = vpop.eup %4003 }
 0x6a1   :  { %4013 = vpow2.f32 %v2569_v32  ;;  %v4614_v5 = vsub.f32 %v2492_v16, %v2514_v63 }
 0x6a2   :  { %v2559_v3 = vmul.f32 1.442695, %v4611_v2 }
 0x6a3   :  { %v4006_v10 = vpop.eup %4005  ;;  %2587 = vadd.xlane.f32.xlu0 %v4004_v1  ;;  %v2528_v4 = vpop.xlane.xlu0 %2527  ;;  %v2561_v7 = vmul.f32 1.442695, %v4614_v5 }
 0x6a4   :  { %4015 = vpow2.f32 %v2559_v3  ;;  %v4618_v6 = vsub.f32 %v4567_v15, %v2528_v4  ;;  %2605 = vadd.xlane.f32.xlu1 %v4006_v10  ;;  %v2530_v13 = vpop.xlane.xlu1 %2529  ;;  %v4008_v18 = vpop.eup %4007 }
 0x6a5   :  { %4017 = vpow2.f32 %v2565_v0  ;;  %v4622_v8 = vsub.f32 %v4570_v17, %v2530_v13 }
 0x6a6   :  { %v2575_v21 = vmul.f32 1.442695, %v4618_v6  ;;  %v4010_v26 = vpop.eup %4009 }
 0x6a7   :  { %2583 = vadd.xlane.f32.xlu0 %v4008_v18  ;;  %v2532_v9 = vpop.xlane.xlu0 %2531  ;;  %v2577_v41 = vmul.f32 1.442695, %v4622_v8 }
 0x6a8   :  { %4019 = vpow2.f32 %v2575_v21  ;;  %v4626_v29 = vsub.f32 %v4575_v19, %v2532_v9  ;;  %2585 = vadd.xlane.f32.xlu1 %v4010_v26  ;;  %v2534_v33 = vpop.xlane.xlu1 %2533 }
 0x6a9   :  { %4021 = vpow2.f32 %v2561_v7  ;;  %v4630_v34 = vsub.f32 %v4578_v20, %v2534_v33 }
 0x6aa   :  { %v4012_v11 = vpop.eup %4011  ;;  %v2579_v42 = vmul.f32 1.442695, %v4626_v29 }
 0x6ab   :  { %v4014_v12 = vpop.eup %4013  ;;  %2595 = vadd.xlane.f32.xlu0 %v4012_v11  ;;  %v2581_v37 = vmul.f32 1.442695, %v4630_v34 }
 0x6ac   :  { %4023 = vpow2.f32 %v2579_v42  ;;  %2601 = vadd.xlane.f32.xlu1 %v4014_v12 }
 0x6ad   :  { %4025 = vpow2.f32 %v2577_v41 }
 0x6ae   :  { %v4016_v14 = vpop.eup %4015  ;;  %4027 = vpow2.f32 %v2581_v37 }
 0x6af   :  { %v4018_v44 = vpop.eup %4017  ;;  %2591 = vadd.xlane.f32.xlu0 %v4016_v14 }
 0x6b0   :  { %2597 = vadd.xlane.f32.xlu1 %v4018_v44 }
 0x6b2   :  { %v4020_v16 = vpop.eup %4019 }
 0x6b3   :  { %v4022_v15 = vpop.eup %4021  ;;  %2607 = vadd.xlane.f32.xlu0 %v4020_v16 }
 0x6b4   :  { %2593 = vadd.xlane.f32.xlu1 %v4022_v15 }
 0x6b6   :  { %v4024_v17 = vpop.eup %4023 }
 0x6b7   :  { %v4026_v19 = vpop.eup %4025  ;;  %2611 = vadd.xlane.f32.xlu0 %v4024_v17 }
 0x6b8   :  { %2609 = vadd.xlane.f32.xlu1 %v4026_v19  ;;  %v4028_v20 = vpop.eup %4027 }
 0x6bc   :  { %2613 = vadd.xlane.f32.xlu1 %v4028_v20 }
 0x728   :  { %v2604_v22 = vpop.xlane.xlu0 %2603 }
 0x729   :  { %4029 = vlog2.f32 %v2604_v22 }
 0x72c   :  { %v2600_v24 = vpop.xlane.xlu0 %2599 }
 0x72d   :  { %4031 = vlog2.f32 %v2600_v24  ;;  %v2590_v25 = vpop.xlane.xlu1 %2589 }
 0x72e   :  { %4033 = vlog2.f32 %v2590_v25 }
 0x730   :  { %v2588_v27 = vpop.xlane.xlu0 %2587 }
 0x731   :  { %4035 = vlog2.f32 %v2588_v27  ;;  %v2606_v35 = vpop.xlane.xlu1 %2605 }
 0x732   :  { %4037 = vlog2.f32 %v2606_v35 }
 0x733   :  { %v4030_v31 = vpop.eup %4029 }
 0x734   :  { %v2636_v38 = vmul.f32 0.6931472, %v4030_v31  ;;  %v2584_v39 = vpop.xlane.xlu0 %2583 }
 0x735   :  { %4039 = vlog2.f32 %v2584_v39  ;;  %v2586_v40 = vpop.xlane.xlu1 %2585 }
 0x736   :  { %v2657_v45 = vsub.f32 %v4582_v23, %v2636_v38  ;;  %4041 = vlog2.f32 %v2586_v40 }
 0x737   :  { %v4032_v47 = vpop.eup %4031 }
 0x738   :  { %v4034_v48 = vpop.eup %4033  ;;  %2673 = vst [vmem:[%s4703_s5 + $0x50] sm:$0xff] %v2657_v45  ;;  %v2632_v49 = vmul.f32 0.6931472, %v4032_v47  ;;  %v2596_v51 = vpop.xlane.xlu0 %2595 }
 0x739   :  { %v2622_v53 = vmul.f32 0.6931472, %v4034_v48  ;;  %4043 = vlog2.f32 %v2596_v51  ;;  %v2602_v55 = vpop.xlane.xlu1 %2601 }
 0x73a   :  { %v2655_v56 = vsub.f32 %v4587_v30, %v2632_v49  ;;  %4045 = vlog2.f32 %v2602_v55 }
 0x73b   :  { %v4036_v57 = vpop.eup %4035  ;;  %v2650_v32 = vsub.f32 %v4589_v36, %v2622_v53 }
 0x73c   :  { %v4038_v59 = vpop.eup %4037  ;;  %2671 = vst [vmem:[%s4703_s5 + $0x40] sm:$0xff] %v2655_v56  ;;  %v2620_v23 = vmul.f32 0.6931472, %v4036_v57  ;;  %v2592_v60 = vpop.xlane.xlu0 %2591 }
 0x73d   :  { %2666 = vst [vmem:[%s4703_s5 + $0x18] sm:$0xff] %v2650_v32  ;;  %v2638_v61 = vmul.f32 0.6931472, %v4038_v59  ;;  %4047 = vlog2.f32 %v2592_v60  ;;  %v2598_v62 = vpop.xlane.xlu1 %2597 }
 0x73e   :  { %v2649_v30 = vsub.f32 %v4585_v28, %v2620_v23  ;;  %4049 = vlog2.f32 %v2598_v62 }
 0x73f   :  { %v4040_v63 = vpop.eup %4039  ;;  %v2658_v36 = vsub.f32 %v4596_v46, %v2638_v61 }
 0x740   :  { %v4042_v0 = vpop.eup %4041  ;;  %2665 = vst [vmem:[%s4703_s5 + $0x10] sm:$0xff] %v2649_v30  ;;  %v2616_v1 = vmul.f32 0.6931472, %v4040_v63  ;;  %v2608_v3 = vpop.xlane.xlu0 %2607 }
 0x741   :  { %2674 = vst [vmem:[%s4703_s5 + $0x58] sm:$0xff] %v2658_v36  ;;  %v2618_v10 = vmul.f32 0.6931472, %v4042_v0  ;;  %4051 = vlog2.f32 %v2608_v3  ;;  %v2594_v4 = vpop.xlane.xlu1 %2593 }
 0x742   :  { %v2647_v28 = vsub.f32 %v4594_v43, %v2616_v1  ;;  %4053 = vlog2.f32 %v2594_v4 }
 0x743   :  { %v4044_v13 = vpop.eup %4043  ;;  %v2648_v46 = vsub.f32 %v4600_v50, %v2618_v10 }
 0x744   :  { %v4046_v7 = vpop.eup %4045  ;;  %2663 = vst [vmem:[%s4703_s5] sm:$0xff] %v2647_v28  ;;  %v2628_v18 = vmul.f32 0.6931472, %v4044_v13  ;;  %v2612_v21 = vpop.xlane.xlu0 %2611 }
 0x745   :  { %2664 = vst [vmem:[%s4703_s5 + $0x8] sm:$0xff] %v2648_v46  ;;  %v2634_v26 = vmul.f32 0.6931472, %v4046_v7  ;;  %4055 = vlog2.f32 %v2612_v21  ;;  %v2610_v9 = vpop.xlane.xlu1 %2609 }
 0x746   :  { %v2653_v43 = vsub.f32 %v4605_v54, %v2628_v18  ;;  %4057 = vlog2.f32 %v2610_v9 }
 0x747   :  { %v4048_v33 = vpop.eup %4047  ;;  %v2656_v50 = vsub.f32 %v4602_v52, %v2634_v26 }
 0x748   :  { %v4050_v41 = vpop.eup %4049  ;;  %2669 = vst [vmem:[%s4703_s5 + $0x30] sm:$0xff] %v2653_v43  ;;  %v2624_v11 = vmul.f32 0.6931472, %v4048_v33 }
 0x749   :  { %2672 = vst [vmem:[%s4703_s5 + $0x48] sm:$0xff] %v2656_v50  ;;  %v2630_v42 = vmul.f32 0.6931472, %v4050_v41  ;;  %v2614_v12 = vpop.xlane.xlu1 %2613 }
 0x74a   :  { %v2651_v37 = vsub.f32 %v4611_v2, %v2624_v11  ;;  %4059 = vlog2.f32 %v2614_v12 }
 0x74b   :  { %v4052_v54 = vpop.eup %4051  ;;  %v2654_v14 = vsub.f32 %v4608_v58, %v2630_v42 }
 0x74c   :  { %v4054_v44 = vpop.eup %4053  ;;  %2667 = vst [vmem:[%s4703_s5 + $0x20] sm:$0xff] %v2651_v37  ;;  %v2640_v52 = vmul.f32 0.6931472, %v4052_v54 }
 0x74d   :  { %2670 = vst [vmem:[%s4703_s5 + $0x38] sm:$0xff] %v2654_v14  ;;  %v2626_v16 = vmul.f32 0.6931472, %v4054_v44 }
 0x74e   :  { %v2659_v15 = vsub.f32 %v4618_v6, %v2640_v52 }
 0x74f   :  { %v4056_v17 = vpop.eup %4055  ;;  %v2652_v2 = vsub.f32 %v4614_v5, %v2626_v16 }
 0x750   :  { %v4058_v19 = vpop.eup %4057  ;;  %2675 = vst [vmem:[%s4703_s5 + $0x60] sm:$0xff] %v2659_v15  ;;  %v2644_v58 = vmul.f32 0.6931472, %v4056_v17 }
 0x751   :  { %2668 = vst [vmem:[%s4703_s5 + $0x28] sm:$0xff] %v2652_v2  ;;  %v2642_v20 = vmul.f32 0.6931472, %v4058_v19 }
 0x752   :  { %v2661_v22 = vsub.f32 %v4626_v29, %v2644_v58 }
 0x753   :  { %v2660_v24 = vsub.f32 %v4622_v8, %v2642_v20 }
 0x754   :  { %v4060_v25 = vpop.eup %4059  ;;  %2677 = vst [vmem:[%s4703_s5 + $0x70] sm:$0xff] %v2661_v22 }
 0x755   :  { %2676 = vst [vmem:[%s4703_s5 + $0x68] sm:$0xff] %v2660_v24  ;;  %v2646_v5 = vmul.f32 0.6931472, %v4060_v25 }
 0x757   :  { %v2662_v6 = vsub.f32 %v4630_v34, %v2646_v5 }
 0x759   :  { %2678 = vst [vmem:[%s4703_s5 + $0x78] sm:$0xff] %v2662_v6 }

</bundles_post_ra>
